<compile_context>
chip_gen: v6e
topology: v6e:2x2x1
jax: 0.10.0
libtpu: 0.0.40
codegen_flags: <defaults>
</compile_context>

<pallas_src>
import functools

import jax
import jax.numpy as jnp
from jax.experimental import pallas as pl
from jax.experimental.pallas import tpu as pltpu


# ----------------------------- Pallas kernels -------------------------------

def _conv3x3_kernel(x_ref, w_ref, o_ref, stats_ref):
    """3x3/s1 conv on one (TH+2, W+2, Cin_p) halo tile via 9 accumulated matmuls.

    x_ref:     (TH+2, W+2, Cin_p)   bf16 (spatially padded row tile, channel-padded)
    w_ref:     (9, Cin_p, Cout_p)   bf16 (one (Cin_p, Cout_p) slab per tap)
    o_ref:     (TH*W, Cout_p)       f32  conv output rows for this tile
    stats_ref: (2, Cout_p)          f32  [per-channel sum; per-channel sum of squares]
    """
    thp2, wp2, cin = x_ref.shape
    th, wo = thp2 - 2, wp2 - 2
    cout = o_ref.shape[-1]

    acc = jnp.zeros((th * wo, cout), jnp.float32)
    for t in range(9):                      # static unroll: 9 MXU matmuls
        di, dj = divmod(t, 3)
        xs = x_ref[di:di + th, dj:dj + wo, :].reshape(th * wo, cin)
        acc = acc + jnp.dot(xs, w_ref[t], preferred_element_type=jnp.float32)

    o_ref[...] = acc.astype(o_ref.dtype)
    # Fused BN-stats epilogue (partial sums for this grid cell).
    stats_ref[...] = jnp.concatenate(
        [jnp.sum(acc, axis=0, keepdims=True),
         jnp.sum(acc * acc, axis=0, keepdims=True)], axis=0)


def _bn_relu_kernel(x_ref, scale_ref, shift_ref, o_ref, *, with_relu):
    """Elementwise y = x*scale + shift (+ReLU) on a lane-dense (TM, Cout_p) tile."""
    y = x_ref[...] * scale_ref[...] + shift_ref[...]
    if with_relu:
        y = jnp.maximum(y, 0.0)
    o_ref[...] = y.astype(o_ref.dtype)


# ------------------------------ JAX wrapper ----------------------------------

def _round_up(x, m):
    return (x + m - 1) // m * m


def conv_block(x_nchw, w_oihw, bias, gamma, beta, *, padding=1, kernel_size=3,
               stride=1, with_nonlinearity=True, eps=1e-5,
               compute_dtype=jnp.bfloat16, row_tile=8, bn_row_tile=256):
    """Forward pass matching PyTorch ConvBlock (fresh module => BN in training mode)."""
    assert kernel_size == 3 and stride == 1 and padding == 1, \
        "only the ConvBlock defaults (k=3, s=1, p=1) are implemented"
    del bias  # exactly canceled by the training-mode BatchNorm mean subtraction

    x = x_nchw.astype(jnp.float32)
    N, Cin, H, W = x.shape
    Cout = w_oihw.shape[0]
    Cin_p = _round_up(Cin, 128)
    Cout_p = _round_up(Cout, 128)

    th = row_tile if H % row_tile == 0 else H       # output rows per grid step
    nH = H // th

    # --- glue: NCHW -> NHWC, channel pad to lane width, spatial halo pad, row tiles.
    x_nhwc = jnp.transpose(x, (0, 2, 3, 1))
    xp = jnp.pad(x_nhwc, ((0, 0), (1, 1), (1, 1), (0, Cin_p - Cin))).astype(compute_dtype)
    # Overlapping row tiles with a 1-row halo each side: (N, nH, th+2, W+2, Cin_p).
    x_tiles = jnp.stack([xp[:, i * th:i * th + th + 2] for i in range(nH)], axis=1)

    # Weights: OIHW -> (9 taps, Cin_p, Cout_p), bf16.
    w = jnp.transpose(w_oihw.astype(jnp.float32), (2, 3, 1, 0))     # (3,3,Cin,Cout)
    w = jnp.pad(w, ((0, 0), (0, 0), (0, Cin_p - Cin), (0, Cout_p - Cout)))
    w_taps = w.reshape(9, Cin_p, Cout_p).astype(compute_dtype)

    M = N * H * W

    # --- kernel 1: tiled conv + fused BN partial-stats epilogue.
    conv_out, stats = pl.pallas_call(
        _conv3x3_kernel,
        out_shape=(jax.ShapeDtypeStruct((M, Cout_p), jnp.float32),
                   jax.ShapeDtypeStruct((N, nH, 2, Cout_p), jnp.float32)),
        grid=(N, nH),
        in_specs=[
            pl.BlockSpec((None, None, th + 2, W + 2, Cin_p),
                         lambda n, h: (n, h, 0, 0, 0)),
            pl.BlockSpec((9, Cin_p, Cout_p), lambda n, h: (0, 0, 0)),
        ],
        out_specs=(
            pl.BlockSpec((th * W, Cout_p), lambda n, h: (n * nH + h, 0)),
            pl.BlockSpec((None, None, 2, Cout_p), lambda n, h: (n, h, 0, 0)),
        ),
        compiler_params=pltpu.CompilerParams(
            dimension_semantics=("parallel", "parallel"),
            # NOTE: blocks here are < 1 MiB; re-derive tile sizes (and this limit)
            # for v7x's 64 MiB physical VMEM when scaling block shapes up.
            vmem_limit_bytes=32 * 1024 * 1024),
    )(x_tiles, w_taps)

    # --- tiny (C,)-sized stats reduction + affine folding in plain JAX.
    count = float(M)
    psum = jnp.sum(stats[:, :, 0, :], axis=(0, 1))                  # (Cout_p,)
    pssq = jnp.sum(stats[:, :, 1, :], axis=(0, 1))
    mean = psum / count
    var = jnp.maximum(pssq / count - mean * mean, 0.0)              # biased var (PyTorch BN)
    inv_std = jax.lax.rsqrt(var + eps)
    gamma_p = jnp.pad(gamma.astype(jnp.float32), (0, Cout_p - Cout))
    beta_p = jnp.pad(beta.astype(jnp.float32), (0, Cout_p - Cout))
    scale = (gamma_p * inv_std).reshape(1, Cout_p)
    shift = (beta_p - mean * gamma_p * inv_std).reshape(1, Cout_p)

    # --- kernel 2: tiled normalize (+ReLU), lane-dense (TM, Cout_p) blocks.
    tm = min(bn_row_tile, M)
    while M % tm:
        tm //= 2
    y2d = pl.pallas_call(
        functools.partial(_bn_relu_kernel, with_relu=bool(with_nonlinearity)),
        out_shape=jax.ShapeDtypeStruct((M, Cout_p), jnp.float32),
        grid=(M // tm,),
        in_specs=[
            pl.BlockSpec((tm, Cout_p), lambda i: (i, 0)),
            pl.BlockSpec((1, Cout_p), lambda i: (0, 0)),
            pl.BlockSpec((1, Cout_p), lambda i: (0, 0)),
        ],
        out_specs=pl.BlockSpec((tm, Cout_p), lambda i: (i, 0)),
        compiler_params=pltpu.CompilerParams(
            dimension_semantics=("parallel",),
            vmem_limit_bytes=32 * 1024 * 1024),
    )(conv_out, scale, shift)

    # --- glue: strip channel padding, back to NCHW for the public API.
    y = y2d.reshape(N, H, W, Cout_p)[..., :Cout]
    return jnp.transpose(y, (0, 3, 1, 2))


# ------------------------------ pure-JAX reference ---------------------------

def conv_block_ref(x, w, b, gamma, beta, *, eps=1e-5, with_nonlinearity=True):
    y = jax.lax.conv_general_dilated(
        x, w, window_strides=(1, 1), padding=((1, 1), (1, 1)),
        dimension_numbers=("NCHW", "OIHW", "NCHW"))
    y = y + b[None, :, None, None]
    mean = jnp.mean(y, axis=(0, 2, 3), keepdims=True)
    var = jnp.mean((y - mean) ** 2, axis=(0, 2, 3), keepdims=True)
    y = (y - mean) * jax.lax.rsqrt(var + eps)
    y = y * gamma[None, :, None, None] + beta[None, :, None, None]
    if with_nonlinearity:
        y = jnp.maximum(y, 0.0)
    return y


# ----------------------------------- main ------------------------------------

if __name__ == "__main__":
    N, Cin, Cout, H, W = 2, 4, 8, 16, 16
    key = jax.random.PRNGKey(0)
    kx, kw, kb, kg, kbeta = jax.random.split(key, 5)

    x = jax.random.normal(kx, (N, Cin, H, W), dtype=jnp.float32)

    # Deterministic parameter init (PyTorch-like shapes: Conv2d + BatchNorm2d).
    fan_in = Cin * 3 * 3
    bound = 1.0 / (fan_in ** 0.5)
    w = jax.random.uniform(kw, (Cout, Cin, 3, 3), jnp.float32, -bound, bound)
    b = jax.random.uniform(kb, (Cout,), jnp.float32, -bound, bound)
    gamma = 1.0 + 0.1 * jax.random.normal(kg, (Cout,), jnp.float32)
    beta = 0.1 * jax.random.normal(kbeta, (Cout,), jnp.float32)

    out = conv_block(x, w, b, gamma, beta, with_nonlinearity=True)
    out = jax.block_until_ready(out)

    ref = jax.block_until_ready(conv_block_ref(x, w, b, gamma, beta))
    assert out.shape == (N, Cout, H, W), out.shape
    # bf16 matmul operands => slightly looser tolerance vs the f32 reference.
    assert jnp.allclose(out, ref, atol=2e-2, rtol=2e-2), \
        float(jnp.max(jnp.abs(out - ref)))

    print("KERNEL_OK")
</pallas_src>

<mosaic_0001>
module attributes {stable_mosaic.version = 11 : i64} {
  func.func @_conv3x3_kernel(%arg0: i32, %arg1: i32, %arg2: memref<1x1x10x18x128xbf16, #tpu.memory_space<vmem>>, %arg3: memref<9x128x128xbf16, #tpu.memory_space<vmem>>, %arg4: memref<128x128xf32, #tpu.memory_space<vmem>>, %arg5: memref<1x1x2x128xf32, #tpu.memory_space<vmem>>) attributes {dimension_semantics = [#tpu.dimension_semantics<parallel>, #tpu.dimension_semantics<parallel>], iteration_bounds = array<i64: 2, 2>, scalar_prefetch = 0 : i64, scratch_operands = 0 : i64, tpu.core_type = #tpu.core_type<tc>, window_params = [{transform_indices = @transform_0, window_bounds = array<i64: 1, 1, 10, 18, 128>}, {pipeline_mode = #tpu.pipeline_mode<synchronous>, transform_indices = @transform_1, window_bounds = array<i64: 9, 128, 128>}, {transform_indices = @transform_2, window_bounds = array<i64: 128, 128>}, {transform_indices = @transform_3, window_bounds = array<i64: 1, 1, 2, 128>}]} {
    %cst = arith.constant 0.000000e+00 : f32
    %0 = vector.broadcast %cst : f32 to vector<128x128xf32>
    %c0 = arith.constant 0 : index
    %c0_0 = arith.constant 0 : index
    %c0_1 = arith.constant 0 : index
    %c0_2 = arith.constant 0 : index
    %c0_3 = arith.constant 0 : index
    %1 = vector.load %arg2[%c0, %c0_0, %c0_1, %c0_2, %c0_3] : memref<1x1x10x18x128xbf16, #tpu.memory_space<vmem>>, vector<1x1x8x16x128xbf16>
    %2 = vector.shape_cast %1 : vector<1x1x8x16x128xbf16> to vector<8x16x128xbf16>
    %3 = vector.shape_cast %2 : vector<8x16x128xbf16> to vector<128x128xbf16>
    %c0_4 = arith.constant 0 : index
    %c0_5 = arith.constant 0 : index
    %c0_6 = arith.constant 0 : index
    %4 = vector.load %arg3[%c0_4, %c0_5, %c0_6] : memref<9x128x128xbf16, #tpu.memory_space<vmem>>, vector<1x128x128xbf16>
    %5 = vector.shape_cast %4 : vector<1x128x128xbf16> to vector<128x128xbf16>
    %cst_7 = arith.constant dense<0.000000e+00> : vector<128x128xf32>
    %6 = tpu.matmul %3, %5, %cst_7 {dimension_numbers = #tpu.dot_dimension_numbers<[1], [0], [0], [1], [0, 0, 1, 1], [], []>} : vector<128x128xbf16>, vector<128x128xbf16>, vector<128x128xf32> -> vector<128x128xf32>
    %7 = arith.addf %0, %6 : vector<128x128xf32>
    %c0_8 = arith.constant 0 : index
    %c0_9 = arith.constant 0 : index
    %c0_10 = arith.constant 0 : index
    %c1 = arith.constant 1 : index
    %c0_11 = arith.constant 0 : index
    %8 = vector.load %arg2[%c0_8, %c0_9, %c0_10, %c1, %c0_11] : memref<1x1x10x18x128xbf16, #tpu.memory_space<vmem>>, vector<1x1x8x16x128xbf16>
    %9 = vector.shape_cast %8 : vector<1x1x8x16x128xbf16> to vector<8x16x128xbf16>
    %10 = vector.shape_cast %9 : vector<8x16x128xbf16> to vector<128x128xbf16>
    %c1_12 = arith.constant 1 : index
    %c0_13 = arith.constant 0 : index
    %c0_14 = arith.constant 0 : index
    %11 = vector.load %arg3[%c1_12, %c0_13, %c0_14] : memref<9x128x128xbf16, #tpu.memory_space<vmem>>, vector<1x128x128xbf16>
    %12 = vector.shape_cast %11 : vector<1x128x128xbf16> to vector<128x128xbf16>
    %cst_15 = arith.constant dense<0.000000e+00> : vector<128x128xf32>
    %13 = tpu.matmul %10, %12, %cst_15 {dimension_numbers = #tpu.dot_dimension_numbers<[1], [0], [0], [1], [0, 0, 1, 1], [], []>} : vector<128x128xbf16>, vector<128x128xbf16>, vector<128x128xf32> -> vector<128x128xf32>
    %14 = arith.addf %7, %13 : vector<128x128xf32>
    %c0_16 = arith.constant 0 : index
    %c0_17 = arith.constant 0 : index
    %c0_18 = arith.constant 0 : index
    %c2 = arith.constant 2 : index
    %c0_19 = arith.constant 0 : index
    %15 = vector.load %arg2[%c0_16, %c0_17, %c0_18, %c2, %c0_19] : memref<1x1x10x18x128xbf16, #tpu.memory_space<vmem>>, vector<1x1x8x16x128xbf16>
    %16 = vector.shape_cast %15 : vector<1x1x8x16x128xbf16> to vector<8x16x128xbf16>
    %17 = vector.shape_cast %16 : vector<8x16x128xbf16> to vector<128x128xbf16>
    %c2_20 = arith.constant 2 : index
    %c0_21 = arith.constant 0 : index
    %c0_22 = arith.constant 0 : index
    %18 = vector.load %arg3[%c2_20, %c0_21, %c0_22] : memref<9x128x128xbf16, #tpu.memory_space<vmem>>, vector<1x128x128xbf16>
    %19 = vector.shape_cast %18 : vector<1x128x128xbf16> to vector<128x128xbf16>
    %cst_23 = arith.constant dense<0.000000e+00> : vector<128x128xf32>
    %20 = tpu.matmul %17, %19, %cst_23 {dimension_numbers = #tpu.dot_dimension_numbers<[1], [0], [0], [1], [0, 0, 1, 1], [], []>} : vector<128x128xbf16>, vector<128x128xbf16>, vector<128x128xf32> -> vector<128x128xf32>
    %21 = arith.addf %14, %20 : vector<128x128xf32>
    %c0_24 = arith.constant 0 : index
    %c0_25 = arith.constant 0 : index
    %c1_26 = arith.constant 1 : index
    %c0_27 = arith.constant 0 : index
    %c0_28 = arith.constant 0 : index
    %22 = vector.load %arg2[%c0_24, %c0_25, %c1_26, %c0_27, %c0_28] : memref<1x1x10x18x128xbf16, #tpu.memory_space<vmem>>, vector<1x1x8x16x128xbf16>
    %23 = vector.shape_cast %22 : vector<1x1x8x16x128xbf16> to vector<8x16x128xbf16>
    %24 = vector.shape_cast %23 : vector<8x16x128xbf16> to vector<128x128xbf16>
    %c3 = arith.constant 3 : index
    %c0_29 = arith.constant 0 : index
    %c0_30 = arith.constant 0 : index
    %25 = vector.load %arg3[%c3, %c0_29, %c0_30] : memref<9x128x128xbf16, #tpu.memory_space<vmem>>, vector<1x128x128xbf16>
    %26 = vector.shape_cast %25 : vector<1x128x128xbf16> to vector<128x128xbf16>
    %cst_31 = arith.constant dense<0.000000e+00> : vector<128x128xf32>
    %27 = tpu.matmul %24, %26, %cst_31 {dimension_numbers = #tpu.dot_dimension_numbers<[1], [0], [0], [1], [0, 0, 1, 1], [], []>} : vector<128x128xbf16>, vector<128x128xbf16>, vector<128x128xf32> -> vector<128x128xf32>
    %28 = arith.addf %21, %27 : vector<128x128xf32>
    %c0_32 = arith.constant 0 : index
    %c0_33 = arith.constant 0 : index
    %c1_34 = arith.constant 1 : index
    %c1_35 = arith.constant 1 : index
    %c0_36 = arith.constant 0 : index
    %29 = vector.load %arg2[%c0_32, %c0_33, %c1_34, %c1_35, %c0_36] : memref<1x1x10x18x128xbf16, #tpu.memory_space<vmem>>, vector<1x1x8x16x128xbf16>
    %30 = vector.shape_cast %29 : vector<1x1x8x16x128xbf16> to vector<8x16x128xbf16>
    %31 = vector.shape_cast %30 : vector<8x16x128xbf16> to vector<128x128xbf16>
    %c4 = arith.constant 4 : index
    %c0_37 = arith.constant 0 : index
    %c0_38 = arith.constant 0 : index
    %32 = vector.load %arg3[%c4, %c0_37, %c0_38] : memref<9x128x128xbf16, #tpu.memory_space<vmem>>, vector<1x128x128xbf16>
    %33 = vector.shape_cast %32 : vector<1x128x128xbf16> to vector<128x128xbf16>
    %cst_39 = arith.constant dense<0.000000e+00> : vector<128x128xf32>
    %34 = tpu.matmul %31, %33, %cst_39 {dimension_numbers = #tpu.dot_dimension_numbers<[1], [0], [0], [1], [0, 0, 1, 1], [], []>} : vector<128x128xbf16>, vector<128x128xbf16>, vector<128x128xf32> -> vector<128x128xf32>
    %35 = arith.addf %28, %34 : vector<128x128xf32>
    %c0_40 = arith.constant 0 : index
    %c0_41 = arith.constant 0 : index
    %c1_42 = arith.constant 1 : index
    %c2_43 = arith.constant 2 : index
    %c0_44 = arith.constant 0 : index
    %36 = vector.load %arg2[%c0_40, %c0_41, %c1_42, %c2_43, %c0_44] : memref<1x1x10x18x128xbf16, #tpu.memory_space<vmem>>, vector<1x1x8x16x128xbf16>
    %37 = vector.shape_cast %36 : vector<1x1x8x16x128xbf16> to vector<8x16x128xbf16>
    %38 = vector.shape_cast %37 : vector<8x16x128xbf16> to vector<128x128xbf16>
    %c5 = arith.constant 5 : index
    %c0_45 = arith.constant 0 : index
    %c0_46 = arith.constant 0 : index
    %39 = vector.load %arg3[%c5, %c0_45, %c0_46] : memref<9x128x128xbf16, #tpu.memory_space<vmem>>, vector<1x128x128xbf16>
    %40 = vector.shape_cast %39 : vector<1x128x128xbf16> to vector<128x128xbf16>
    %cst_47 = arith.constant dense<0.000000e+00> : vector<128x128xf32>
    %41 = tpu.matmul %38, %40, %cst_47 {dimension_numbers = #tpu.dot_dimension_numbers<[1], [0], [0], [1], [0, 0, 1, 1], [], []>} : vector<128x128xbf16>, vector<128x128xbf16>, vector<128x128xf32> -> vector<128x128xf32>
    %42 = arith.addf %35, %41 : vector<128x128xf32>
    %c0_48 = arith.constant 0 : index
    %c0_49 = arith.constant 0 : index
    %c2_50 = arith.constant 2 : index
    %c0_51 = arith.constant 0 : index
    %c0_52 = arith.constant 0 : index
    %43 = vector.load %arg2[%c0_48, %c0_49, %c2_50, %c0_51, %c0_52] : memref<1x1x10x18x128xbf16, #tpu.memory_space<vmem>>, vector<1x1x8x16x128xbf16>
    %44 = vector.shape_cast %43 : vector<1x1x8x16x128xbf16> to vector<8x16x128xbf16>
    %45 = vector.shape_cast %44 : vector<8x16x128xbf16> to vector<128x128xbf16>
    %c6 = arith.constant 6 : index
    %c0_53 = arith.constant 0 : index
    %c0_54 = arith.constant 0 : index
    %46 = vector.load %arg3[%c6, %c0_53, %c0_54] : memref<9x128x128xbf16, #tpu.memory_space<vmem>>, vector<1x128x128xbf16>
    %47 = vector.shape_cast %46 : vector<1x128x128xbf16> to vector<128x128xbf16>
    %cst_55 = arith.constant dense<0.000000e+00> : vector<128x128xf32>
    %48 = tpu.matmul %45, %47, %cst_55 {dimension_numbers = #tpu.dot_dimension_numbers<[1], [0], [0], [1], [0, 0, 1, 1], [], []>} : vector<128x128xbf16>, vector<128x128xbf16>, vector<128x128xf32> -> vector<128x128xf32>
    %49 = arith.addf %42, %48 : vector<128x128xf32>
    %c0_56 = arith.constant 0 : index
    %c0_57 = arith.constant 0 : index
    %c2_58 = arith.constant 2 : index
    %c1_59 = arith.constant 1 : index
    %c0_60 = arith.constant 0 : index
    %50 = vector.load %arg2[%c0_56, %c0_57, %c2_58, %c1_59, %c0_60] : memref<1x1x10x18x128xbf16, #tpu.memory_space<vmem>>, vector<1x1x8x16x128xbf16>
    %51 = vector.shape_cast %50 : vector<1x1x8x16x128xbf16> to vector<8x16x128xbf16>
    %52 = vector.shape_cast %51 : vector<8x16x128xbf16> to vector<128x128xbf16>
    %c7 = arith.constant 7 : index
    %c0_61 = arith.constant 0 : index
    %c0_62 = arith.constant 0 : index
    %53 = vector.load %arg3[%c7, %c0_61, %c0_62] : memref<9x128x128xbf16, #tpu.memory_space<vmem>>, vector<1x128x128xbf16>
    %54 = vector.shape_cast %53 : vector<1x128x128xbf16> to vector<128x128xbf16>
    %cst_63 = arith.constant dense<0.000000e+00> : vector<128x128xf32>
    %55 = tpu.matmul %52, %54, %cst_63 {dimension_numbers = #tpu.dot_dimension_numbers<[1], [0], [0], [1], [0, 0, 1, 1], [], []>} : vector<128x128xbf16>, vector<128x128xbf16>, vector<128x128xf32> -> vector<128x128xf32>
    %56 = arith.addf %49, %55 : vector<128x128xf32>
    %c0_64 = arith.constant 0 : index
    %c0_65 = arith.constant 0 : index
    %c2_66 = arith.constant 2 : index
    %c2_67 = arith.constant 2 : index
    %c0_68 = arith.constant 0 : index
    %57 = vector.load %arg2[%c0_64, %c0_65, %c2_66, %c2_67, %c0_68] : memref<1x1x10x18x128xbf16, #tpu.memory_space<vmem>>, vector<1x1x8x16x128xbf16>
    %58 = vector.shape_cast %57 : vector<1x1x8x16x128xbf16> to vector<8x16x128xbf16>
    %59 = vector.shape_cast %58 : vector<8x16x128xbf16> to vector<128x128xbf16>
    %c8 = arith.constant 8 : index
    %c0_69 = arith.constant 0 : index
    %c0_70 = arith.constant 0 : index
    %60 = vector.load %arg3[%c8, %c0_69, %c0_70] : memref<9x128x128xbf16, #tpu.memory_space<vmem>>, vector<1x128x128xbf16>
    %61 = vector.shape_cast %60 : vector<1x128x128xbf16> to vector<128x128xbf16>
    %cst_71 = arith.constant dense<0.000000e+00> : vector<128x128xf32>
    %62 = tpu.matmul %59, %61, %cst_71 {dimension_numbers = #tpu.dot_dimension_numbers<[1], [0], [0], [1], [0, 0, 1, 1], [], []>} : vector<128x128xbf16>, vector<128x128xbf16>, vector<128x128xf32> -> vector<128x128xf32>
    %63 = arith.addf %56, %62 : vector<128x128xf32>
    %c0_72 = arith.constant 0 : index
    %c0_73 = arith.constant 0 : index
    %64 = vector.load %arg4[%c0_72, %c0_73] : memref<128x128xf32, #tpu.memory_space<vmem>>, vector<128x128xf32>
    tpu.vector_store %arg4[%c0_72, %c0_73], %63 {strides = array<i32>} : memref<128x128xf32, #tpu.memory_space<vmem>>, vector<128x128xf32>,
    %cst_74 = arith.constant dense<0.000000e+00> : vector<128xf32>
    %65 = vector.multi_reduction <add>, %63, %cst_74 [0] : vector<128x128xf32> to vector<128xf32>
    %66 = vector.shape_cast %65 : vector<128xf32> to vector<1x128xf32>
    %67 = arith.mulf %63, %63 : vector<128x128xf32>
    %cst_75 = arith.constant dense<0.000000e+00> : vector<128xf32>
    %68 = vector.multi_reduction <add>, %67, %cst_75 [0] : vector<128x128xf32> to vector<128xf32>
    %69 = vector.shape_cast %68 : vector<128xf32> to vector<1x128xf32>
    %70 = tpu.concatenate %66, %69 in 0 : vector<1x128xf32>, vector<1x128xf32> -> vector<2x128xf32>
    %c0_76 = arith.constant 0 : index
    %c0_77 = arith.constant 0 : index
    %c0_78 = arith.constant 0 : index
    %c0_79 = arith.constant 0 : index
    %71 = vector.load %arg5[%c0_76, %c0_77, %c0_78, %c0_79] : memref<1x1x2x128xf32, #tpu.memory_space<vmem>>, vector<1x1x2x128xf32>
    %72 = vector.shape_cast %71 : vector<1x1x2x128xf32> to vector<2x128xf32>
    %73 = vector.shape_cast %70 : vector<2x128xf32> to vector<1x1x2x128xf32>
    tpu.vector_store %arg5[%c0_76, %c0_77, %c0_78, %c0_79], %73 {strides = array<i32>} : memref<1x1x2x128xf32, #tpu.memory_space<vmem>>, vector<1x1x2x128xf32>,
    return
  }
  func.func @transform_0(%arg0: i32, %arg1: i32) -> (i32, i32, i32, i32, i32) {
    %c0_i32 = arith.constant 0 : i32
    %c0_i32_0 = arith.constant 0 : i32
    %c0_i32_1 = arith.constant 0 : i32
    %c0_i32_2 = arith.constant 0 : i32
    return %arg0, %arg1, %c0_i32, %c0_i32_0, %c0_i32_1 : i32, i32, i32, i32, i32
  }
  func.func @transform_1(%arg0: i32, %arg1: i32) -> (i32, i32, i32) {
    %c0_i32 = arith.constant 0 : i32
    %c0_i32_0 = arith.constant 0 : i32
    %c0_i32_1 = arith.constant 0 : i32
    %c0_i32_2 = arith.constant 0 : i32
    return %c0_i32, %c0_i32_0, %c0_i32_1 : i32, i32, i32
  }
  func.func @transform_2(%arg0: i32, %arg1: i32) -> (i32, i32) {
    %c2_i32 = arith.constant 2 : i32
    %0 = arith.muli %arg0, %c2_i32 : i32
    %1 = arith.addi %0, %arg1 : i32
    %c0_i32 = arith.constant 0 : i32
    %c0_i32_0 = arith.constant 0 : i32
    return %1, %c0_i32 : i32, i32
  }
  func.func @transform_3(%arg0: i32, %arg1: i32) -> (i32, i32, i32, i32) {
    %c0_i32 = arith.constant 0 : i32
    %c0_i32_0 = arith.constant 0 : i32
    %c0_i32_1 = arith.constant 0 : i32
    return %arg0, %arg1, %c0_i32, %c0_i32_0 : i32, i32, i32, i32
  }
}

</mosaic_0001>

<bundles_post_ra>
// kernel: tpu_custom_call.1
= control target key start
LH: loop header
LB: loop body
LE: loop exit
PB: predicated region body
PF: predicated region fallthrough
CT: control target
= control target key end

     0   :  { %9 = vsyncpa [#allocation3], 0  ;;  %s5785_s0 = inlined_call_operand.vmem [shape: bf16[2,2,10,18,128], index: 0, kind: input, shape index: {}]   ;;  %s5786_s1 = inlined_call_operand.vmem [shape: bf16[9,128,128], index: 1, kind: input, shape index: {}]   ;;  %s5787_s2 = inlined_call_operand.hbm [shape: f32[512,128], index: 2, kind: output, shape index: {0}]   ;;  %s5788_s3 = inlined_call_operand.hbm [shape: f32[2,2,2,128], index: 3, kind: output, shape index: {1}]  }
   0x1   :  { %11 = vsyncpa [#allocation3 + $0x1], 0 }
   0x2   :  { %12 = vsyncpa [#allocation5], 0 }
   0x3   :  { %14 = vsyncpa [#allocation5 + $0x1], 0  ;;  %s4528_s12 = smov 0   ;;  %s4530_s13 = smov 0  }
   0x4   :  { %s4532_s14 = smov 0   ;;  %s4534_s15 = smov 0  }
   0x5   :  { %s4536_s16 = smov 0   ;;  %s4538_s17 = smov 0  }
   0x6   :  { %s4540_s18 = smov 0   ;;  %s4542_s19 = smov 0  }
   0x7   :  { %s4544_s20 = smov 0   ;;  %s4546_s21 = smov 0  }
   0x8   :  { %s4548_s22 = smov 0  }
   0x9 LB: > { %5794 = sst [smem:[#allocation8_spill]] %s4474_s15  ;;  %s3296_s23 = sadd.s32 4294967295, %s4502_s22   ;;  %s4502_s22 = sphi %s4548_s22, %s20_s22   ;;  %s4498_s21 = sphi %s4546_s21, %s5846_s21   ;;  %s4494_s20 = sphi %s4544_s20, %s5845_s20   ;;  %s4490_s19 = sphi %s4542_s19, %s5844_s19   ;;  %s4486_s18 = sphi %s4540_s18, %s5843_s18   ;;  %s4482_s17 = sphi %s4538_s17, %s5852_s17   ;;  %s4478_s16 = sphi %s4536_s16, %s5851_s16   ;;  %s4474_s15 = sphi %s4534_s15, %s5850_s15   ;;  %s4470_s14 = sphi %s4532_s14, %s5849_s14   ;;  %s4466_s13 = sphi %s4530_s13, %s5848_s13   ;;  %s4462_s12 = sphi %s4528_s12, %s5847_s12  }
   0xa   : > { %5795 = sst [smem:[#allocation9_spill]] %s4494_s20  ;;  %s3297_s24 = sadd.s32 4294967294, %s4502_s22  }
   0xb   : > { %5796 = sst [smem:[#allocation10_spill]] %s4498_s21  ;;  %s29_s25 = sadd.s32 1, %s4494_s20 }
   0xc   : > { %s32_s26 = sadd.s32 1, %s4498_s21  ;;  %p30_p0 = scmp.ge.s32.totalorder %s29_s25, 2 }
   0xd   : > { %s3298_s27 = sshll.u32 %s4498_s21, 1  ;;  %s92_s29 = sadd.s32 1, %s4482_s17 }
   0xe   : > { %s86_s28 = sadd.s32 %s4494_s20, %s3298_s27  ;;  %s5854_s25 = smov (%p30_p0, %s29_s25), 0 }
   0xf   : > { %5797 = sst [smem:[#allocation11_spill]] %s5854_s25  ;;  %s5856_s26 = smov (!%p30_p0, %s32_s26), %s4498_s21 }
  0x10   : > { %p102_p1 = scmp.ne.s32.totalorder %s4482_s17, %s4478_s16  ;;  %p4595_p2 = scmp.eq.s32.totalorder %s3296_s23, 3 }
  0x11   : > { %p34_p3 = scmp.ge.s32.totalorder %s5856_s26, 2  ;;  %p108_p4 = scmp.ne.s32.totalorder %s4478_s16, %s4474_s15 }
  0x12   : > { %p4603_p5 = por %p4595_p2, %p102_p1  ;;  %p4607_p6 = scmp.eq.s32.totalorder %s3297_s24, 3 }
  0x13   : > { %s5858_s26 = smov (%p34_p3, %s5856_s26), 0  ;;  %s116_s7 = ssub.s32 %s4494_s20, %s5854_s25 }
  0x14   : > { %5801 = sst [smem:[#allocation12_spill]] %s5858_s26  ;;  %p4615_p7 = por %p4607_p6, %p108_p4 }
  0x15   : > { %s3299_s8 = sshll.u32 %s5858_s26, 1  ;;  %s115_s9 = ssub.s32 %s4498_s21, %s5858_s26 }
  0x16   : > { %s88_s10 = sadd.s32 %s3299_s8, %s5854_s25  ;;  %s117_s11 = sor.u32 %s116_s7, %s115_s9 }
  0x17   : > { %s89_s23 = ssub.s32 %s86_s28, %s88_s10  ;;  %p118_p8 = scmp.eq.s32.totalorder %s117_s11, 0 }
  0x18   : > { %p90_p9 = scmp.eq.s32.totalorder %s89_s23, 0  ;;  %s120_s24 = sadd.s32 1, %s4470_s14 }
  0x19   : > { %s4627_s27 = scalar_select %p118_p8, %s4470_s14, %s120_s24  }
  0x1a   : > { %s4630_s15 = scalar_select %p90_p9, %s4482_s17, %s92_s29  }
  0x1b   : > { %p130_p10 = scmp.ne.s32.totalorder %s4470_s14, %s4466_s13  ;;  %p136_p11 = scmp.ne.s32.totalorder %s4466_s13, %s4462_s12 }
  0x1c   : > { %p3302_p12 = scmp.ge.s32.totalorder %s4502_s22, 1  ;;  %p170_p13 = scmp.lt.s32.totalorder %s4502_s22, 5 }
  0x1d   : > { %p4640_p0 = por %p130_p10, %p4595_p2  ;;  %p4646_p1 = por %p136_p11, %p4607_p6 }
  0x1e   : > { %p171_p3 = pnand %p3302_p12, %p170_p13 }
  0x20   : > { %174 = sbr.rel (%p171_p3) target bundleno = 474 (0x1da), region = 28 }
  0x25   : > { %v4260_v0 = vld [vmem:[%s5786_s1 + $0x78] sm:$0xff]   ;;  %p203_p4 = scmp.lt.s32.totalorder %s4490_s19, 1  ;;  %p205_p2 = scmp.lt.s32.totalorder %s4486_s18, 1  ;;  %v4262_v2 = vld [vmem:[%s5786_s1 + $0x70] sm:$0xff]   ;;  %v4264_v4 = vld [vmem:[%s5786_s1 + $0x68] sm:$0xff]   ;;  %vm862_vm3 = vcmask 1042432  }
  0x26   : > { %v4261_v1 = vld [vmem:[%s5786_s1 + $0x38] sm:$0xff]   ;;  %3852 = vmatprep.subr.bf16.mxu0 %v4260_v0  ;;  %v4263_v3 = vld [vmem:[%s5786_s1 + $0x30] sm:$0xff]   ;;  %v4265_v5 = vld [vmem:[%s5786_s1 + $0x28] sm:$0xff]   ;;  %vm256_vm0 = vsmask.f32 3328  ;;  %vm863_vm4 = vcmask 1046532  }
  0x27   : > { %s204_s10 = scalar_select %p203_p4, %s4490_s19, 1  ;;  %3884 = vmatprep.subr.bf16.mxu1 %v4261_v1  ;;  %3853 = vmatpush3.bf16.msra.mxu0 %v4260_v0  ;;  %v4266_v6 = vld [vmem:[%s5786_s1 + $0x60] sm:$0xff]   ;;  %v4268_v8 = vld [vmem:[%s5786_s1 + $0x58] sm:$0xff]   ;;  %v4270_v10 = vld [vmem:[%s5786_s1 + $0x50] sm:$0xff]   ;;  %vm257_vm1 = vsmask.f32 7440 }
  0x28   : > { %s206_s24 = scalar_select %p205_p2, %s4486_s18, 1  ;;  %3885 = vmatpush3.bf16.msra.mxu1 %v4261_v1  ;;  %3854 = vmatprep.subr.bf16.mxu0 %v4262_v2  ;;  %v4267_v7 = vld [vmem:[%s5786_s1 + $0x20] sm:$0xff]   ;;  %v4269_v9 = vld [vmem:[%s5786_s1 + $0x18] sm:$0xff]   ;;  %v4271_v11 = vld [vmem:[%s5786_s1 + $0x10] sm:$0xff]  }
  0x29   : > { %s4157_s29 = smul.u32 60, %s204_s10  ;;  %3886 = vmatprep.subr.bf16.mxu1 %v4263_v3  ;;  %v4272_v26 = vld [vmem:[%s5786_s1 + $0x48] sm:$0xff]   ;;  %v4274_v35 = vld [vmem:[%s5786_s1 + $0x40] sm:$0xff]   ;;  %vm4730_vm2 = vmor %vm256_vm0, %vm257_vm1  ;;  %s3700_s26 = sshll.u32 %s4490_s19, 1 }
  0x2a   : > { %s4156_s5 = smul.u32 30, %s206_s24  ;;  %v4273_v30 = vld [vmem:[%s5786_s1 + $0x8] sm:$0xff]   ;;  %v4275_v47 = vld [vmem:[%s5786_s1] sm:$0xff]   ;;  %v4278_v55 = vld [vmem:[%s5786_s1 + $0xb8] sm:$0xff]   ;;  %s5648_s19 = sadd.s32 %s4486_s18, %s3700_s26 }
  0x2b   : > { %3855 = vmatpush3.bf16.msra.mxu0 %v4262_v2  ;;  %v4279_v61 = vld [vmem:[%s5786_s1 + $0xf8] sm:$0xff]   ;;  %vm4903_vm5 = vmor %vm862_vm3, %vm863_vm4  ;;  %s3707_s28 = sshll.u32 %s5648_s19, 11  ;;  %s4504_s25 = smov [#allocation2]  }
  0x2c   : > { %s209_s9 = sadd.s32 %s4157_s29, %s4156_s5  ;;  %3887 = vmatpush3.bf16.msra.mxu1 %v4263_v3  ;;  %3856 = vmatprep.subr.bf16.mxu0 %v4264_v4  ;;  %s5673_s29 = scalar_lea.hbm %s5787_s2, %s3707_s28 }
  0x2d   : > { %3888 = vmatprep.subr.bf16.mxu1 %v4265_v5  ;;  %s3305_s10 = sshll.u32 %s209_s9, 2  ;;  %s4360_s9 = sshll.u32 %s4504_s25, 4  ;;  %s4361_s9 = int_to_ptr.vmem [resolvable:$false] %s4360_s9 }
  0x2e   : > { %s4687_s5 = scalar_lea.vmem %s5785_s0, %s3305_s10  ;;  %s4362_s11 = scalar_lea.vmem %s4361_s9, 4096 }
  0x2f   : > { %3857 = vmatpush3.bf16.msra.mxu0 %v4264_v4  ;;  %v216_v12 = vld [vmem:[%s4687_s5] sm:$0xf]  ;;  %v4697_v13 = vld [vmem:[%s4687_s5 + $0x4] sm:$0xf]  ;;  %v4700_v14 = vld [vmem:[%s4687_s5 + $0x8] sm:$0x1] }
  0x30   : > { %3889 = vmatpush3.bf16.msra.mxu1 %v4265_v5  ;;  %3858 = vmatprep.subr.bf16.mxu0 %v4266_v6  ;;  %v260_v15 = vshrl.u32 %v216_v12, 16  ;;  %v263_v16 = vshll.u32 %v216_v12, 16  ;;  %v269_v17 = vshll.u32 %v4697_v13, 16  ;;  %v273_v18 = vshrl.u32 %v4697_v13, 16  ;;  %v4706_v20 = vld [vmem:[%s4687_s5 + $0xc] sm:$0xf] }
  0x31   : > { %3890 = vmatprep.subr.bf16.mxu1 %v4267_v7  ;;  %v279_v19 = vshll.u32 %v4700_v14, 16  ;;  %v3338_v23 = vcombine.low %v216_v12, %v4697_v13  ;;  %v4710_v24 = vld [vmem:[%s4687_s5 + $0x10] sm:$0xf]  ;;  %v4713_v25 = vld [vmem:[%s4687_s5 + $0x14] sm:$0x1]  ;;  %v284_v29 = vshrl.u32 %v4706_v20, 16 }
  0x32   : > { %v262_v21 = vrot.slane %v260_v15, 4  ;;  %v265_v22 = vrot.slane %v263_v16, 5  ;;  %v271_v27 = vrot.slane %v269_v17, 5  ;;  %v275_v28 = vrot.slane %v273_v18, 4  ;;  %v4750_v56 = vld [vmem:[%s4687_s5 + $0x18] sm:$0xf] }
  0x33   : > { %3859 = vmatpush3.bf16.msra.mxu0 %v4266_v6  ;;  %3900 = vmatprep.mubr.bf16.mxu1 %v3338_v23  ;;  %v287_v32 = vshll.u32 %v4706_v20, 16  ;;  %v293_v33 = vshll.u32 %v4710_v24, 16  ;;  %v297_v34 = vshrl.u32 %v4710_v24, 16  ;;  %v281_v38 = vrot.slane %v279_v19, 5  ;;  %v4753_v57 = vld [vmem:[%s4687_s5 + $0x1c] sm:$0xf] }
  0x34   : > { %3891 = vmatpush3.bf16.msra.mxu1 %v4267_v7  ;;  %3860 = vmatprep.subr.bf16.mxu0 %v4268_v8  ;;  %v266_v31 = vor.u32 %v265_v22, %v262_v21  ;;  %v276_v37 = vor.u32 %v275_v28, %v271_v27  ;;  %v286_v39 = vrot.slane %v284_v29, 4  ;;  %v303_v40 = vshll.u32 %v4713_v25, 16  ;;  %v4759_v62 = vld [vmem:[%s4687_s5 + $0x20] sm:$0x1]  ;;  %v4767_v4 = vld [vmem:[%s4687_s5 + $0x24] sm:$0xf] }
  0x35   : > { %3892 = vmatprep.subr.bf16.mxu1 %v4269_v9  ;;  %v289_v42 = vrot.slane %v287_v32, 5  ;;  %v295_v43 = vrot.slane %v293_v33, 5  ;;  %v299_v44 = vrot.slane %v297_v34, 4  ;;  %v870_v46 = vrot.slane %v4700_v14, 5  ;;  %v4280_v12 = vld [vmem:[%s5786_s1 + $0xb0] sm:$0xff]  }
  0x36   : > { %v267_v41 = vrot.slane %v266_v31, 4  ;;  %v277_v45 = vrot.slane %v276_v37, 4  ;;  %v305_v51 = vrot.slane %v303_v40, 5  ;;  %v877_v53 = vrot.slane %v4713_v25, 5  ;;  %v4281_v28 = vld [vmem:[%s5786_s1 + $0xf0] sm:$0xff]  }
  0x37   : > { %3861 = vmatpush3.bf16.msra.mxu0 %v4268_v8  ;;  %v290_v49 = vor.u32 %v289_v42, %v286_v39  ;;  %v300_v50 = vor.u32 %v299_v44, %v295_v43  ;;  %v3339_v54 = vcombine.low %v4706_v20, %v4710_v24  ;;  %v308_v63 = vshrl.u32 %v4750_v56, 16  ;;  %v4774_v8 = vld [vmem:[%s4687_s5 + $0x28] sm:$0xf]  ;;  %v4796_v40 = vld [vmem:[%s4687_s5 + $0x30] sm:$0xf] }
  0x38   : > { %3893 = vmatpush3.bf16.msra.mxu1 %v4269_v9  ;;  %3862 = vmatprep.subr.bf16.mxu0 %v4270_v10  ;;  %v272_v48 = vsel %vm4730_vm2, %v267_v41, %v271_v27  ;;  %v282_v52 = vsel %vm4730_vm2, %v277_v45, %v281_v38  ;;  %v311_v0 = vshll.u32 %v4750_v56, 16  ;;  %v317_v1 = vshll.u32 %v4753_v57, 16  ;;  %v4777_v9 = vld [vmem:[%s4687_s5 + $0x2c] sm:$0x1]  ;;  %v4806_v45 = vld [vmem:[%s4687_s5 + $0x34] sm:$0xf] }
  0x39   : > { %3894 = vmatprep.subr.bf16.mxu1 %v4271_v11  ;;  %v3322_v58 = vcombine.low %v272_v48, %v282_v52  ;;  %v291_v59 = vrot.slane %v290_v49, 4  ;;  %v301_v60 = vrot.slane %v300_v50, 4  ;;  %v321_v2 = vshrl.u32 %v4753_v57, 16  ;;  %v4284_v44 = vld [vmem:[%s5786_s1 + $0xa8] sm:$0xff]  }
  0x3a   : > { %v327_v3 = vshll.u32 %v4759_v62, 16  ;;  %v310_v7 = vrot.slane %v308_v63, 4  ;;  %v313_v15 = vrot.slane %v311_v0, 5  ;;  %v319_v16 = vrot.slane %v317_v1, 5  ;;  %v4286_v0 = vld [vmem:[%s5786_s1 + $0xa0] sm:$0xff]  }
  0x3b   : > { %3863 = vmatpush3.bf16.msra.mxu0 %v4270_v10  ;;  %3868 = vmatprep.mubr.bf16.mxu0 %v3322_v58  ;;  %v296_v5 = vsel %vm4730_vm2, %v291_v59, %v295_v43  ;;  %v306_v6 = vsel %vm4730_vm2, %v301_v60, %v305_v51  ;;  %v867_v10 = vrot.slane %v4697_v13, 5  ;;  %v323_v17 = vrot.slane %v321_v2, 4  ;;  %v4285_v51 = vld [vmem:[%s5786_s1 + $0xe8] sm:$0xff]  }
  0x3c   : > { %3895 = vmatpush3.bf16.msra.mxu1 %v4271_v11  ;;  %3864 = vmatprep.subr.bf16.mxu0 %v4272_v26  ;;  %v3323_v11 = vcombine.low %v296_v5, %v306_v6  ;;  %v329_v18 = vrot.slane %v327_v3, 5  ;;  %v332_v19 = vshrl.u32 %v4767_v4, 16  ;;  %v335_v20 = vshll.u32 %v4767_v4, 16  ;;  %v4287_v6 = vld [vmem:[%s5786_s1 + $0xe0] sm:$0xff]  }
  0x3d   : > { %3896 = vmatprep.subr.bf16.mxu1 %v4273_v30  ;;  %v341_v21 = vshll.u32 %v4774_v8, 16  ;;  %v314_v22 = vor.u32 %v313_v15, %v310_v7  ;;  %v324_v23 = vor.u32 %v323_v17, %v319_v16  ;;  %v351_v27 = vshll.u32 %v4777_v9, 16 }
  0x3e   : > { %v3340_v29 = vcombine.low %v4750_v56, %v4753_v57  ;;  %v337_v31 = vrot.slane %v335_v20, 5  ;;  %v3341_v39 = vcombine.low %v4767_v4, %v4774_v8  ;;  %v356_v48 = vshrl.u32 %v4796_v40, 16  ;;  %v4833_v4 = vld [vmem:[%s4687_s5 + $0x44] sm:$0x1] }
  0x3f   : > { %3865 = vmatpush3.bf16.msra.mxu0 %v4272_v26  ;;  %v345_v26 = vshrl.u32 %v4774_v8, 16  ;;  %v343_v32 = vrot.slane %v341_v21, 5  ;;  %v315_v33 = vrot.slane %v314_v22, 4  ;;  %v325_v34 = vrot.slane %v324_v23, 4 }
  0x40   : > { %3897 = vmatpush3.bf16.msra.mxu1 %v4273_v30  ;;  %3866 = vmatprep.subr.bf16.mxu0 %v4274_v35  ;;  %v334_v30 = vrot.slane %v332_v19, 4  ;;  %v353_v37 = vrot.slane %v351_v27, 5  ;;  %v359_v52 = vshll.u32 %v4796_v40, 16  ;;  %v358_v58 = vrot.slane %v356_v48, 4 }
  0x41   : > { %3898 = vmatprep.subr.bf16.mxu1 %v4275_v47  ;;  %v320_v41 = vsel %vm4730_vm2, %v315_v33, %v319_v16  ;;  %v330_v42 = vsel %vm4730_vm2, %v325_v34, %v329_v18  ;;  %v369_v59 = vshrl.u32 %v4806_v45, 16  ;;  %v3342_v3 = vcombine.low %v4796_v40, %v4806_v45 }
  0x42   : > { %v338_v38 = vor.u32 %v337_v31, %v334_v30  ;;  %v3324_v49 = vcombine.low %v320_v41, %v330_v42  ;;  %v361_v1 = vrot.slane %v359_v52, 5  ;;  %v399_v22 = vshll.u32 %v4833_v4, 16  ;;  %v4862_v41 = vld [vmem:[%s4687_s5 + $0x50] sm:$0x1] }
  0x43   : > { %3867 = vmatpush3.bf16.msra.mxu0 %v4274_v35  ;;  %v347_v35 = vrot.slane %v345_v26, 4  ;;  %v371_v7 = vrot.slane %v369_v59, 4  ;;  %v895_v25 = vrot.slane %v4806_v45, 5 }
  0x44   : > { %3899 = vmatpush3.bf16.msra.mxu1 %v4275_v47  ;;  %3916 = vmatprep.subr.bf16.mxu0 %v4278_v55  ;;  %v4809_v47 = vld [vmem:[%s4687_s5 + $0x38] sm:$0x1]  ;;  %v339_v50 = vrot.slane %v338_v38, 4  ;;  %v362_v16 = vor.u32 %v361_v1, %v358_v58  ;;  %v401_v31 = vrot.slane %v399_v22, 5  ;;  %v4857_v38 = vld [vmem:[%s4687_s5 + $0x4c] sm:$0xf] }
  0x45   : > { %3948 = vmatprep.subr.bf16.mxu1 %v4279_v61  ;;  %v348_v43 = vor.u32 %v347_v35, %v343_v32  ;;  %v375_v60 = vshll.u32 %v4809_v47, 16  ;;  %v417_v52 = vshrl.u32 %v4857_v38, 16 }
  0x46   : > { %3869 = vmatmul.mubr.bf16.vlgmr.msra.gmra.mxu0 %v3323_v11  ;;  %v344_v63 = vsel %vm4730_vm2, %v339_v50, %v343_v32  ;;  %v363_v23 = vrot.slane %v362_v16, 4  ;;  %v4291_v32 = vld [vmem:[%s5786_s1 + $0xd8] sm:$0xff]   ;;  %v4292_v50 = vld [vmem:[%s5786_s1 + $0x90] sm:$0xff]  }
  0x47   : > { %3901 = vmatmul.mubr.bf16.vlgmr.msra.gmra.mxu1 %v3339_v54  ;;  %3917 = vmatpush3.bf16.msra.mxu0 %v4278_v55  ;;  %v365_v54 = vshll.u32 %v4806_v45, 16  ;;  %v4818_v55 = vld [vmem:[%s4687_s5 + $0x3c] sm:$0xf]  ;;  %v349_v56 = vrot.slane %v348_v43, 4  ;;  %v377_v11 = vrot.slane %v375_v60, 5  ;;  %v423_v60 = vshll.u32 %v4862_v41, 16 }
  0x48   : > { %3949 = vmatpush3.bf16.msra.mxu1 %v4279_v61  ;;  %3918 = vmatprep.subr.bf16.mxu0 %v4280_v12  ;;  %v4823_v61 = vld [vmem:[%s4687_s5 + $0x40] sm:$0xf]  ;;  %v383_v17 = vshll.u32 %v4818_v55, 16 }
  0x49   : > { %3950 = vmatprep.subr.bf16.mxu1 %v4281_v28  ;;  %3904 = vmatprep.mubr.bf16.mxu1 %v3340_v29  ;;  %v367_v2 = vrot.slane %v365_v54, 5  ;;  %v354_v5 = vsel %vm4730_vm2, %v349_v56, %v353_v37  ;;  %v389_v18 = vshll.u32 %v4823_v61, 16  ;;  %v393_v21 = vshrl.u32 %v4823_v61, 16  ;;  %v228_v37 = vld [vmem:[%s4687_s5 + $0x48] sm:$0xf]  ;;  %v4293_v56 = vld [vmem:[%s5786_s1 + $0xd0] sm:$0xff]  }
  0x4a   : > { %3872 = vmatprep.mubr.bf16.mxu0 %v3324_v49  ;;  %v3325_v15 = vcombine.low %v344_v63, %v354_v5  ;;  %v385_v26 = vrot.slane %v383_v17, 5  ;;  %v3343_v35 = vcombine.low %v4818_v55, %v4823_v61  ;;  %v404_v42 = vshrl.u32 %v228_v37, 16  ;;  %v4873_v54 = vld [vmem:[%s4687_s5 + $0x58] sm:$0xf]  ;;  %v4880_v63 = vld [vmem:[%s4687_s5 + $0x5c] sm:$0x1] }
  0x4b   : > { %3919 = vmatpush3.bf16.msra.mxu0 %v4280_v12  ;;  %v380_v12 = vshrl.u32 %v4818_v55, 16  ;;  %v372_v19 = vor.u32 %v371_v7, %v367_v2  ;;  %v391_v27 = vrot.slane %v389_v18, 5  ;;  %v395_v30 = vrot.slane %v393_v21, 4  ;;  %v4296_v18 = vld [vmem:[%s5786_s1 + $0x88] sm:$0xff]  }
  0x4c   : > { %3951 = vmatpush3.bf16.msra.mxu1 %v4281_v28  ;;  %3920 = vmatprep.subr.bf16.mxu0 %v4284_v44  ;;  %v4290_v28 = vld [vmem:[%s5786_s1 + $0x98] sm:$0xff]   ;;  %v368_v33 = vsel %vm4730_vm2, %v363_v23, %v367_v2  ;;  %v407_v43 = vshll.u32 %v228_v37, 16  ;;  %v406_v58 = vrot.slane %v404_v42, 4  ;;  %v425_v7 = vrot.slane %v423_v60, 5 }
  0x4d   : > { %3952 = vmatprep.subr.bf16.mxu1 %v4285_v51  ;;  %v382_v20 = vrot.slane %v380_v12, 4  ;;  %v373_v29 = vrot.slane %v372_v19, 4  ;;  %v396_v40 = vor.u32 %v395_v30, %v391_v27  ;;  %v437_v17 = vshll.u32 %v4873_v54, 16 }
  0x4e   : > { %3873 = vmatmul.mubr.bf16.gmra.mxu0 %v3325_v15  ;;  %v409_v59 = vrot.slane %v407_v43, 5  ;;  %v441_v21 = vshrl.u32 %v4873_v54, 16  ;;  %v447_v22 = vshll.u32 %v4880_v63, 16  ;;  %v902_v45 = vrot.slane %v4823_v61, 5 }
  0x4f   : > { %3905 = vmatmul.mubr.bf16.gmra.mxu1 %v3341_v39  ;;  %3921 = vmatpush3.bf16.msra.mxu0 %v4284_v44  ;;  %v386_v34 = vor.u32 %v385_v26, %v382_v20  ;;  %v378_v39 = vsel %vm4730_vm2, %v373_v29, %v377_v11  ;;  %v4865_v44 = vld [vmem:[%s4687_s5 + $0x54] sm:$0xf]  ;;  %v397_v55 = vrot.slane %v396_v40, 4  ;;  %v4297_v29 = vld [vmem:[%s5786_s1 + $0xc8] sm:$0xff]   ;;  %v4298_v40 = vld [vmem:[%s5786_s1 + $0x80] sm:$0xff]  }
  0x50   : > { %3953 = vmatpush3.bf16.msra.mxu1 %v4285_v51  ;;  %3922 = vmatprep.subr.bf16.mxu0 %v4286_v0  ;;  %v3326_v48 = vcombine.low %v368_v33, %v378_v39  ;;  %v413_v51 = vshll.u32 %v4857_v38, 16  ;;  %v428_v11 = vshrl.u32 %v4865_v44, 16  ;;  %v431_v16 = vshll.u32 %v4865_v44, 16 }
  0x51   : > { %3954 = vmatprep.subr.bf16.mxu1 %v4287_v6  ;;  %3908 = vmatprep.mubr.bf16.mxu1 %v3342_v3  ;;  %v387_v49 = vrot.slane %v386_v34, 4  ;;  %v419_v3 = vrot.slane %v417_v52, 4  ;;  %v402_v5 = vsel %vm4730_vm2, %v397_v55, %v401_v31  ;;  %v443_v30 = vrot.slane %v441_v21, 4  ;;  %v838_v31 = vld [vmem:[%s4687_s5] sm:$0xe]  ;;  %v4300_v52 = vld [vmem:[%s4687_s5 + $0xc] sm:$0xff]  }
  0x52   : > { %3876 = vmatprep.mubr.bf16.mxu0 %v3326_v48  ;;  %v415_v2 = vrot.slane %v413_v51, 5  ;;  %v430_v20 = vrot.slane %v428_v11, 4  ;;  %v433_v26 = vrot.slane %v431_v16, 5  ;;  %v869_v33 = vrot.slane %v867_v10, 4  ;;  %v839_v55 = vld [vmem:[%s4687_s5 + $0xc] sm:$0xe] }
  0x53   : > { %3923 = vmatpush3.bf16.msra.mxu0 %v4286_v0  ;;  %v392_v1 = vsel %vm4730_vm2, %v387_v49, %v391_v27  ;;  %v3344_v0 = vcombine.low %v228_v37, %v4857_v38  ;;  %v439_v27 = vrot.slane %v437_v17, 5  ;;  %v874_v34 = vrot.slane %v4710_v24, 5  ;;  %v4299_v24 = vld [vmem:[%s5786_s1 + $0xc0] sm:$0xff]  }
  0x54   : > { %3955 = vmatpush3.bf16.msra.mxu1 %v4287_v6  ;;  %3924 = vmatprep.subr.bf16.mxu0 %v4290_v28  ;;  %v410_v6 = vor.u32 %v409_v59, %v406_v58  ;;  %v3327_v12 = vcombine.low %v392_v1, %v402_v5  ;;  %v420_v15 = vor.u32 %v419_v3, %v415_v2  ;;  %v3354_v42 = vrot.slane %v838_v31, 9  ;;  %v4303_v3 = vld [vmem:[%s5786_s1 + $0x178] sm:$0xff]   ;;  %v4311_v31 = vld [vmem:[%s5786_s1 + $0x160] sm:$0xff]  }
  0x55   : > { %3956 = vmatprep.subr.bf16.mxu1 %v4291_v32  ;;  %v434_v37 = vor.u32 %v433_v26, %v430_v20  ;;  %v3345_v39 = vcombine.low %v4865_v44, %v4873_v54  ;;  %v444_v48 = vor.u32 %v443_v30, %v439_v27  ;;  %v449_v49 = vrot.slane %v447_v22, 5  ;;  %v842_v22 = vld [vmem:[%s4687_s5 + $0x30] sm:$0xe]  ;;  %v4308_v30 = vld [vmem:[%s5786_s1 + $0x128] sm:$0xff]  }
  0x56   : > { %v411_v19 = vrot.slane %v410_v6, 4  ;;  %3877 = vmatmul.mubr.bf16.gmra.mxu0 %v3327_v12  ;;  %v421_v23 = vrot.slane %v420_v15, 4  ;;  %v876_v58 = vrot.slane %v874_v34, 4  ;;  %v3355_v13 = vrot.slane %v839_v55, 9  ;;  %v4301_v6 = vld [vmem:[%s4687_s5 + $0x18] sm:$0xff]   ;;  %v4306_v15 = vld [vmem:[%s4687_s5 + $0x24] sm:$0xff]  }
  0x57   : > { %3909 = vmatmul.mubr.bf16.gmra.mxu1 %v3343_v35  ;;  %3925 = vmatpush3.bf16.msra.mxu0 %v4290_v28  ;;  %v435_v51 = vrot.slane %v434_v37, 4  ;;  %v445_v44 = vrot.slane %v444_v48, 4  ;;  %v881_v1 = vrot.slane %v4753_v57, 5  ;;  %v884_v57 = vrot.slane %v4759_v62, 5  ;;  %v841_v62 = vld [vmem:[%s4687_s5 + $0x24] sm:$0xe] }
  0x58   : > { %3957 = vmatpush3.bf16.msra.mxu1 %v4291_v32  ;;  %3926 = vmatprep.subr.bf16.mxu0 %v4292_v50  ;;  %v416_v28 = vsel %vm4730_vm2, %v411_v19, %v415_v2  ;;  %v426_v35 = vsel %vm4730_vm2, %v421_v23, %v425_v7  ;;  %v840_v2 = vld [vmem:[%s4687_s5 + $0x18] sm:$0xe]  ;;  %v4305_v7 = vld [vmem:[%s5786_s1 + $0x170] sm:$0xff]   ;;  %v875_v11 = vsel %vm4903_vm5, %v3355_v13, %v874_v34  ;;  %v888_v16 = vrot.slane %v4774_v8, 5 }
  0x59   : > { %3958 = vmatprep.subr.bf16.mxu1 %v4293_v56  ;;  %3912 = vmatprep.mubr.bf16.mxu1 %v3344_v0  ;;  %v3328_v43 = vcombine.low %v416_v28, %v426_v35  ;;  %v440_v59 = vsel %vm4730_vm2, %v435_v51, %v439_v27  ;;  %v450_v60 = vsel %vm4730_vm2, %v445_v44, %v449_v49  ;;  %v3356_v0 = vrot.slane %v840_v2, 9  ;;  %v4307_v26 = vld [vmem:[%s4687_s5 + $0x30] sm:$0xff]   ;;  %v4309_v27 = vld [vmem:[%s5786_s1 + $0x168] sm:$0xff]  }
  0x5a   : > { %v883_v5 = vrot.slane %v881_v1, 4  ;;  %v878_v12 = vsel %vm4903_vm5, %v876_v58, %v877_v53  ;;  %v4304_v53 = vld [vmem:[%s5786_s1 + $0x130] sm:$0xff]   ;;  %v891_v8 = vrot.slane %v4777_v9, 5  ;;  %v3357_v20 = vrot.slane %v841_v62, 9 }
  0x5b   : > { %3927 = vmatpush3.bf16.msra.mxu0 %v4292_v50  ;;  %3880 = vmatprep.mubr.bf16.mxu0 %v3328_v43  ;;  %v868_v50 = vsel %vm4903_vm5, %v3354_v42, %v867_v10  ;;  %v3329_v10 = vcombine.low %v440_v59, %v450_v60  ;;  %v882_v17 = vsel %vm4903_vm5, %v3356_v0, %v881_v1  ;;  %v890_v21 = vrot.slane %v888_v16, 4  ;;  %v845_v44 = vld [vmem:[%s4687_s5 + $0x54] sm:$0xe]  ;;  %v4313_v60 = vld [vmem:[%s4687_s5 + $0x48] sm:$0xff]  }
  0x5c   : > { %3959 = vmatpush3.bf16.msra.mxu1 %v4293_v56  ;;  %3928 = vmatprep.subr.bf16.mxu0 %v4296_v18  ;;  %v871_v56 = vsel %vm4903_vm5, %v869_v33, %v870_v46  ;;  %v4302_v46 = vld [vmem:[%s5786_s1 + $0x138] sm:$0xff]   ;;  %v3379_v19 = vcombine.low %v875_v11, %v878_v12  ;;  %v897_v28 = vrot.slane %v895_v25, 4  ;;  %v898_v9 = vrot.slane %v4809_v47, 5  ;;  %v3442_v0 = vld [vmem:[%s4687_s5 + $0xc] sm:$0xf] }
  0x5d   : > { %3960 = vmatprep.subr.bf16.mxu1 %v4297_v29  ;;  %v3378_v14 = vcombine.low %v868_v50, %v871_v56  ;;  %v843_v33 = vld [vmem:[%s4687_s5 + $0x3c] sm:$0xe]  ;;  %v889_v61 = vsel %vm4903_vm5, %v3357_v20, %v888_v16  ;;  %v892_v34 = vsel %vm4903_vm5, %v890_v21, %v891_v8  ;;  %v909_v35 = vrot.slane %v4857_v38, 5  ;;  %v3444_v11 = vld [vmem:[%s4687_s5 + $0x14] sm:$0x1]  ;;  %v4321_v16 = vld [vmem:[%s5786_s1 + $0x148] sm:$0xff]  }
  0x5e   : > { %3881 = vmatmul.mubr.bf16.gmra.mxu0 %v3329_v10  ;;  %v4312_v47 = vld [vmem:[%s4687_s5 + $0x3c] sm:$0xff]   ;;  %v904_v37 = vrot.slane %v902_v45, 4  ;;  %v899_v42 = vsel %vm4903_vm5, %v897_v28, %v898_v9  ;;  %v3359_v43 = vrot.slane %v843_v33, 9  ;;  %v912_v48 = vrot.slane %v4862_v41, 5  ;;  %v4320_v9 = vld [vmem:[%s5786_s1 + $0x108] sm:$0xff]  }
  0x5f   : > { %3913 = vmatmul.mubr.bf16.gmra.mxu1 %v3345_v39  ;;  %3929 = vmatpush3.bf16.msra.mxu0 %v4296_v18  ;;  %v885_v18 = vsel %vm4903_vm5, %v883_v5, %v884_v57  ;;  %v905_v39 = vrot.slane %v4833_v4, 5  ;;  %v3381_v49 = vcombine.low %v889_v61, %v892_v34  ;;  %v911_v38 = vrot.slane %v909_v35, 4  ;;  %v4310_v4 = vld [vmem:[%s5786_s1 + $0x120] sm:$0xff]   ;;  %v4316_v5 = vld [vmem:[%s5786_s1 + $0x110] sm:$0xff]   ;;  %v3446_v28 = vld [vmem:[%s4687_s5 + $0x1c] sm:$0xf] }
  0x60   : > { %3961 = vmatpush3.bf16.msra.mxu1 %v4297_v29  ;;  %3930 = vmatprep.subr.bf16.mxu0 %v4298_v40  ;;  %v3380_v23 = vcombine.low %v882_v17, %v885_v18  ;;  %v3358_v29 = vrot.slane %v842_v22, 9  ;;  %v916_v51 = vrot.slane %v4873_v54, 5  ;;  %v919_v41 = vrot.slane %v4880_v63, 5  ;;  %v4315_v54 = vld [vmem:[%s5786_s1 + $0x158] sm:$0xff]   ;;  %v3447_v33 = vld [vmem:[%s4687_s5 + $0x20] sm:$0x1] }
  0x61   : > { %3962 = vmatprep.subr.bf16.mxu1 %v4299_v24  ;;  %3964 = vmatprep.mubr.bf16.mxu1 %v4300_v52  ;;  %v3361_v56 = vrot.slane %v845_v44, 9  ;;  %v903_v58 = vsel %vm4903_vm5, %v3359_v43, %v902_v45  ;;  %v906_v59 = vsel %vm4903_vm5, %v904_v37, %v905_v39  ;;  %v913_v13 = vsel %vm4903_vm5, %v911_v38, %v912_v48  ;;  %v4314_v63 = vld [vmem:[%s5786_s1 + $0x118] sm:$0xff]  }
  0x62   : > { %3932 = vmatprep.mubr.bf16.mxu0 %v3378_v14  ;;  %v918_v50 = vrot.slane %v916_v51, 4  ;;  %v3383_v2 = vcombine.low %v903_v58, %v906_v59  ;;  %v1399_v12 = vshrl.u32 %v3442_v0, 16  ;;  %v1418_v18 = vshll.u32 %v3444_v11, 16 }
  0x63   : > { %3931 = vmatpush3.bf16.msra.mxu0 %v4298_v40  ;;  %v896_v40 = vsel %vm4903_vm5, %v3358_v29, %v895_v25  ;;  %v5015_v10 = vsel %vm4903_vm5, %v3361_v56, %v916_v51  ;;  %v3498_v25 = vld [vmem:[%s4687_s5 + $0xc] sm:$0xe]  ;;  %v1837_v22 = vrot.slane %v3444_v11, 5  ;;  %v1432_v39 = vshll.u32 %v3446_v28, 16  ;;  %v3450_v11 = vld [vmem:[%s4687_s5 + $0x2c] sm:$0x1] }
  0x64   : > { %3963 = vmatpush3.bf16.msra.mxu1 %v4299_v24  ;;  %3980 = vmatprep.subr.bf16.mxu0 %v4302_v46  ;;  %v844_v24 = vld [vmem:[%s4687_s5 + $0x48] sm:$0xe]  ;;  %v3382_v55 = vcombine.low %v896_v40, %v899_v42  ;;  %v5019_v14 = vsel %vm4903_vm5, %v918_v50, %v919_v41  ;;  %v1401_v8 = vrot.slane %v1399_v12, 4  ;;  %v3506_v21 = vrot.slane %v3498_v25, 9  ;;  %v4323_v42 = vld [vmem:[%s5786_s1 + $0x140] sm:$0xff]  }
  0x65   : > { %4012 = vmatprep.subr.bf16.mxu1 %v4303_v3  ;;  %v3360_v52 = vrot.slane %v844_v24, 9  ;;  %v1436_v40 = vshrl.u32 %v3446_v28, 16  ;;  %v1434_v51 = vrot.slane %v1432_v39, 5  ;;  %v1841_v41 = vrot.slane %v3446_v28, 5 }
  0x66   : > { %3933 = vmatmul.mubr.bf16.vlgmr.msra.gmra.mxu0 %v3379_v19  ;;  %v1844_v59 = vrot.slane %v3447_v33, 5 }
  0x67   : > { %3965 = vmatmul.mubr.bf16.vlgmr.msra.gmra.mxu1 %v4301_v6  ;;  %3981 = vmatpush3.bf16.msra.mxu0 %v4302_v46  ;;  %v910_v1 = vsel %vm4903_vm5, %v3360_v52, %v909_v35  ;;  %v4317_v46 = vld [vmem:[%s5786_s1 + $0x150] sm:$0xff]   ;;  %v3385_v6 = vcombine.low %v5015_v10, %v5019_v14  ;;  %v1442_v52 = vshll.u32 %v3447_v33, 16  ;;  %v4324_v10 = vld [vmem:[%s5786_s1 + $0x1b8] sm:$0xff]  }
  0x68   : > { %4013 = vmatpush3.bf16.msra.mxu1 %v4303_v3  ;;  %3968 = vmatprep.mubr.bf16.mxu1 %v4306_v15  ;;  %v4318_v3 = vld [vmem:[%s4687_s5 + $0x54] sm:$0xff]   ;;  %v3384_v57 = vcombine.low %v910_v1, %v913_v13  ;;  %v1402_v15 = vshll.u32 %v3442_v0, 16  ;;  %v3448_v0 = vld [vmem:[%s4687_s5 + $0x24] sm:$0xf]  ;;  %v3501_v33 = vld [vmem:[%s4687_s5 + $0x30] sm:$0xe] }
  0x69   : > { %4014 = vmatprep.subr.bf16.mxu1 %v4305_v7  ;;  %3982 = vmatprep.subr.bf16.mxu0 %v4304_v53  ;;  %v1444_v58 = vrot.slane %v1442_v52, 5  ;;  %v1447_v12 = vshrl.u32 %v3448_v0, 16 }
  0x6a   : > { %3936 = vmatprep.mubr.bf16.mxu0 %v3380_v23  ;;  %v1404_v20 = vrot.slane %v1402_v15, 5  ;;  %v3445_v23 = vld [vmem:[%s4687_s5 + $0x18] sm:$0xf]  ;;  %v1450_v15 = vshll.u32 %v3448_v0, 16 }
  0x6b   : > { %3983 = vmatpush3.bf16.msra.mxu0 %v4304_v53  ;;  %v4319_v53 = vld [vmem:[%s4687_s5 + $0x60] sm:$0xff]   ;;  %v1423_v61 = vshrl.u32 %v3445_v23, 16  ;;  %v1426_v34 = vshll.u32 %v3445_v23, 16 }
  0x6c   : > { %4015 = vmatpush3.bf16.msra.mxu1 %v4305_v7  ;;  %3984 = vmatprep.subr.bf16.mxu0 %v4308_v30  ;;  %v3443_v7 = vld [vmem:[%s4687_s5 + $0x10] sm:$0xf] }
  0x6d   : > { %4016 = vmatprep.subr.bf16.mxu1 %v4309_v27  ;;  %v1408_v62 = vshll.u32 %v3443_v7, 16  ;;  %v1412_v17 = vshrl.u32 %v3443_v7, 16  ;;  %v1834_v19 = vrot.slane %v3443_v7, 5  ;;  %v1428_v24 = vrot.slane %v1426_v34, 5 }
  0x6e   : > { %3937 = vmatmul.mubr.bf16.gmra.mxu0 %v3381_v49  ;;  %v1425_v49 = vrot.slane %v1423_v61, 4 }
  0x6f   : > { %3969 = vmatmul.mubr.bf16.gmra.mxu1 %v4307_v26  ;;  %3985 = vmatpush3.bf16.msra.mxu0 %v4308_v30  ;;  %v1410_v26 = vrot.slane %v1408_v62, 5  ;;  %v1414_v45 = vrot.slane %v1412_v17, 4  ;;  %v1836_v29 = vrot.slane %v1834_v19, 4  ;;  %v1405_v30 = vor.u32 %v1404_v20, %v1401_v8 }
  0x70   : > { %4017 = vmatpush3.bf16.msra.mxu1 %v4309_v27  ;;  %3972 = vmatprep.mubr.bf16.mxu1 %v4312_v47  ;;  %v1420_v27 = vrot.slane %v1418_v18, 5  ;;  %v3499_v47 = vld [vmem:[%s4687_s5 + $0x18] sm:$0xe]  ;;  %v1429_v44 = vor.u32 %v1428_v24, %v1425_v49  ;;  %v3451_v18 = vld [vmem:[%s4687_s5 + $0x30] sm:$0xf]  ;;  %v1452_v8 = vrot.slane %v1450_v15, 5 }
  0x71   : > { %4018 = vmatprep.subr.bf16.mxu1 %v4311_v31  ;;  %3986 = vmatprep.subr.bf16.mxu0 %v4310_v4  ;;  %v1415_v35 = vor.u32 %v1414_v45, %v1410_v26  ;;  %v1838_v37 = vsel %vm4903_vm5, %v1836_v29, %v1837_v22  ;;  %v1406_v43 = vrot.slane %v1405_v30, 4  ;;  %v3507_v50 = vrot.slane %v3499_v47, 9  ;;  %v4326_v29 = vld [vmem:[%s5786_s1 + $0x1b0] sm:$0xff]  }
  0x72   : > { %3940 = vmatprep.mubr.bf16.mxu0 %v3382_v55  ;;  %v1466_v20 = vshll.u32 %v3450_v11, 16  ;;  %v1851_v30 = vrot.slane %v3450_v11, 5 }
  0x73   : > { %3987 = vmatpush3.bf16.msra.mxu0 %v4310_v4  ;;  %v1416_v38 = vrot.slane %v1415_v35, 4  ;;  %v1438_v4 = vrot.slane %v1436_v40, 4  ;;  %v1411_v55 = vsel %vm4730_vm2, %v1406_v43, %v1410_v26  ;;  %v1842_v1 = vsel %vm4903_vm5, %v3507_v50, %v1841_v41 }
  0x74   : > { %4019 = vmatpush3.bf16.msra.mxu1 %v4311_v31  ;;  %3988 = vmatprep.subr.bf16.mxu0 %v4314_v63  ;;  %v1835_v31 = vsel %vm4903_vm5, %v3506_v21, %v1834_v19  ;;  %v4327_v19 = vld [vmem:[%s5786_s1 + $0x1f0] sm:$0xff]   ;;  %v1474_v35 = vshll.u32 %v3451_v18, 16 }
  0x75   : > { %4020 = vmatprep.subr.bf16.mxu1 %v4315_v54  ;;  %v3530_v48 = vcombine.low %v1835_v31, %v1838_v37  ;;  %v1439_v56 = vor.u32 %v1438_v4, %v1434_v51  ;;  %v3452_v21 = vld [vmem:[%s4687_s5 + $0x34] sm:$0xf]  ;;  %v1471_v31 = vshrl.u32 %v3451_v18, 16 }
  0x76   : > { %3941 = vmatmul.mubr.bf16.gmra.mxu0 %v3383_v2  ;;  %v1480_v40 = vshll.u32 %v3452_v21, 16  ;;  %v1476_v49 = vrot.slane %v1474_v35, 5 }
  0x77   : > { %3973 = vmatmul.mubr.bf16.gmra.mxu1 %v4313_v60  ;;  %3989 = vmatpush3.bf16.msra.mxu0 %v4314_v63  ;;  %v4322_v60 = vld [vmem:[%s5786_s1 + $0x100] sm:$0xff]   ;;  %v1430_v63 = vrot.slane %v1429_v44, 4  ;;  %v1440_v2 = vrot.slane %v1439_v56, 4  ;;  %v1473_v39 = vrot.slane %v1471_v31, 4  ;;  %v3454_v56 = vld [vmem:[%s4687_s5 + $0x3c] sm:$0xf] }
  0x78   : > { %4021 = vmatpush3.bf16.msra.mxu1 %v4315_v54  ;;  %3976 = vmatprep.mubr.bf16.mxu1 %v4318_v3  ;;  %v1421_v54 = vsel %vm4730_vm2, %v1416_v38, %v1420_v27  ;;  %v4325_v3 = vld [vmem:[%s5786_s1 + $0x1f8] sm:$0xff]   ;;  %v4329_v38 = vld [vmem:[%s5786_s1 + $0x1e8] sm:$0xff]   ;;  %v1482_v52 = vrot.slane %v1480_v40, 5  ;;  %v1495_v0 = vshrl.u32 %v3454_v56, 16 }
  0x79   : > { %4022 = vmatprep.subr.bf16.mxu1 %v4317_v46  ;;  %3990 = vmatprep.subr.bf16.mxu0 %v4316_v5  ;;  %v3482_v13 = vcombine.low %v1411_v55, %v1421_v54  ;;  %v1445_v62 = vsel %vm4730_vm2, %v1440_v2, %v1444_v58  ;;  %v5086_v27 = vld [vmem:[%s4687_s5 + $0x38] sm:$0x1]  ;;  %v1477_v50 = vor.u32 %v1476_v49, %v1473_v39  ;;  %v3509_v54 = vrot.slane %v3501_v33, 9  ;;  %v3503_v31 = vld [vmem:[%s4687_s5 + $0x48] sm:$0xe] }
  0x7a   : > { %3944 = vmatprep.mubr.bf16.mxu0 %v3384_v57  ;;  %v1435_v57 = vsel %vm4730_vm2, %v1430_v63, %v1434_v51  ;;  %v1490_v24 = vshll.u32 %v5086_v27, 16  ;;  %v4328_v63 = vld [vmem:[%s5786_s1 + $0x1a8] sm:$0xff]  }
  0x7b   : > { %3991 = vmatpush3.bf16.msra.mxu0 %v4316_v5  ;;  %v3449_v5 = vld [vmem:[%s4687_s5 + $0x28] sm:$0xf]  ;;  %v3483_v25 = vcombine.low %v1435_v57, %v1445_v62  ;;  %v1478_v2 = vrot.slane %v1477_v50, 4 }
  0x7c   : > { %4023 = vmatpush3.bf16.msra.mxu1 %v4317_v46  ;;  %3992 = vmatprep.subr.bf16.mxu0 %v4320_v9  ;;  %v1843_v46 = vrot.slane %v1841_v41, 4  ;;  %v1456_v14 = vshll.u32 %v3449_v5, 16  ;;  %v1848_v45 = vrot.slane %v3449_v5, 5  ;;  %v1492_v41 = vrot.slane %v1490_v24, 5 }
  0x7d   : > { %4024 = vmatprep.subr.bf16.mxu1 %v4321_v16  ;;  %v1483_v62 = vsel %vm4730_vm2, %v1478_v2, %v1482_v52 }
  0x7e   : > { %3945 = vmatmul.mubr.bf16.gmra.mxu0 %v3385_v6  ;;  %v1845_v7 = vsel %vm4903_vm5, %v1843_v46, %v1844_v59  ;;  %v1460_v6 = vshrl.u32 %v3449_v5, 16  ;;  %v1458_v22 = vrot.slane %v1456_v14, 5  ;;  %v1850_v47 = vrot.slane %v1848_v45, 4  ;;  %v3455_v46 = vld [vmem:[%s4687_s5 + $0x40] sm:$0xf] }
  0x7f   : > { %3977 = vmatmul.mubr.bf16.gmra.mxu1 %v4319_v53  ;;  %3993 = vmatpush3.bf16.msra.mxu0 %v4320_v9  ;;  %v3531_v17 = vcombine.low %v1842_v1, %v1845_v7  ;;  %v1449_v53 = vrot.slane %v1447_v12, 4  ;;  %v1468_v9 = vrot.slane %v1466_v20, 5  ;;  %v4331_v1 = vld [vmem:[%s5786_s1 + $0x1e0] sm:$0xff]   ;;  %v1498_v5 = vshll.u32 %v3454_v56, 16  ;;  %v3458_v20 = vld [vmem:[%s4687_s5 + $0x4c] sm:$0xf] }
  0x80   : > { %4025 = vmatpush3.bf16.msra.mxu1 %v4321_v16  ;;  %4028 = vmatprep.mubr.bf16.mxu1 %v3530_v48  ;;  %v3500_v16 = vld [vmem:[%s4687_s5 + $0x24] sm:$0xe]  ;;  %v1462_v23 = vrot.slane %v1460_v6, 4  ;;  %v1852_v48 = vsel %vm4903_vm5, %v1850_v47, %v1851_v30  ;;  %v1504_v57 = vshll.u32 %v3455_v46, 16  ;;  %v1508_v15 = vshrl.u32 %v3455_v46, 16 }
  0x81   : > { %4026 = vmatprep.subr.bf16.mxu1 %v4323_v42  ;;  %3994 = vmatprep.subr.bf16.mxu0 %v4322_v60  ;;  %v3508_v26 = vrot.slane %v3500_v16, 9  ;;  %v1453_v28 = vor.u32 %v1452_v8, %v1449_v53  ;;  %v3502_v16 = vld [vmem:[%s4687_s5 + $0x3c] sm:$0xe]  ;;  %v1500_v14 = vrot.slane %v1498_v5, 5  ;;  %v3457_v8 = vld [vmem:[%s4687_s5 + $0x48] sm:$0xf] }
  0x82   : > { %3996 = vmatprep.mubr.bf16.mxu0 %v3482_v13  ;;  %v1463_v61 = vor.u32 %v1462_v23, %v1458_v22  ;;  %v1858_v13 = vrot.slane %v5086_v27, 5  ;;  %v1506_v6 = vrot.slane %v1504_v57, 5  ;;  %v4333_v27 = vld [vmem:[%s5786_s1 + $0x1d8] sm:$0xff]   ;;  %v1528_v47 = vshll.u32 %v3458_v20, 16  ;;  %v3460_v56 = vld [vmem:[%s4687_s5 + $0x54] sm:$0xf] }
  0x83   : > { %3995 = vmatpush3.bf16.msra.mxu0 %v4322_v60  ;;  %v1849_v34 = vsel %vm4903_vm5, %v3508_v26, %v1848_v45  ;;  %v1454_v37 = vrot.slane %v1453_v28, 4  ;;  %v1855_v60 = vrot.slane %v3452_v21, 5  ;;  %v3510_v26 = vrot.slane %v3502_v16, 9  ;;  %v5129_v45 = vld [vmem:[%s4687_s5 + $0x50] sm:$0x1] }
  0x84   : > { %4027 = vmatpush3.bf16.msra.mxu1 %v4323_v42  ;;  %4044 = vmatprep.subr.bf16.mxu0 %v4324_v10  ;;  %v1484_v42 = vshrl.u32 %v3452_v21, 16  ;;  %v1464_v43 = vrot.slane %v1463_v61, 4  ;;  %v3532_v4 = vcombine.low %v1849_v34, %v1852_v48  ;;  %v1519_v61 = vshrl.u32 %v3457_v8, 16  ;;  %v3504_v16 = vld [vmem:[%s4687_s5 + $0x54] sm:$0xe] }
  0x85   : > { %4076 = vmatprep.subr.bf16.mxu1 %v4325_v3  ;;  %v1459_v51 = vsel %vm4730_vm2, %v1454_v37, %v1458_v22  ;;  %v1856_v11 = vsel %vm4903_vm5, %v3509_v54, %v1855_v60  ;;  %v1857_v12 = vrot.slane %v1855_v60, 4  ;;  %v1522_v34 = vshll.u32 %v3457_v8, 16  ;;  %v3463_v8 = vld [vmem:[%s4687_s5 + $0x60] sm:$0xf] }
  0x86   : > { %3997 = vmatmul.mubr.bf16.vlgmr.msra.gmra.mxu0 %v3483_v25  ;;  %v1486_v55 = vrot.slane %v1484_v42, 4  ;;  %v1469_v44 = vsel %vm4730_vm2, %v1464_v43, %v1468_v9  ;;  %v1862_v9 = vrot.slane %v3455_v46, 5  ;;  %v1532_v40 = vshrl.u32 %v3458_v20, 16  ;;  %v4332_v42 = vld [vmem:[%s5786_s1 + $0x198] sm:$0xff]   ;;  %v4337_v46 = vld [vmem:[%s5786_s1 + $0x1c8] sm:$0xff]  }
  0x87   : > { %4029 = vmatmul.mubr.bf16.vlgmr.msra.gmra.mxu1 %v3531_v17  ;;  %4045 = vmatpush3.bf16.msra.mxu0 %v4324_v10  ;;  %v3484_v58 = vcombine.low %v1459_v51, %v1469_v44  ;;  %v4330_v17 = vld [vmem:[%s5786_s1 + $0x1a0] sm:$0xff]   ;;  %v1497_v10 = vrot.slane %v1495_v0, 4  ;;  %v1859_v25 = vsel %vm4903_vm5, %v1857_v12, %v1858_v13  ;;  %v1521_v48 = vrot.slane %v1519_v61, 4 }
  0x88   : > { %4077 = vmatpush3.bf16.msra.mxu1 %v4325_v3  ;;  %4046 = vmatprep.subr.bf16.mxu0 %v4326_v29  ;;  %v1487_v59 = vor.u32 %v1486_v55, %v1482_v52  ;;  %v3456_v3 = vld [vmem:[%s4687_s5 + $0x44] sm:$0x1]  ;;  %v3533_v22 = vcombine.low %v1856_v11, %v1859_v25  ;;  %v1863_v37 = vsel %vm4903_vm5, %v3510_v26, %v1862_v9  ;;  %v1864_v39 = vrot.slane %v1862_v9, 4 }
  0x89   : > { %4078 = vmatprep.subr.bf16.mxu1 %v4327_v19  ;;  %4032 = vmatprep.mubr.bf16.mxu1 %v3532_v4  ;;  %v1514_v53 = vshll.u32 %v3456_v3, 16  ;;  %v1501_v23 = vor.u32 %v1500_v14, %v1497_v10  ;;  %v1865_v30 = vrot.slane %v3456_v3, 5  ;;  %v1524_v49 = vrot.slane %v1522_v34, 5  ;;  %v3462_v3 = vld [vmem:[%s4687_s5 + $0x5c] sm:$0x1] }
  0x8a   : > { %4000 = vmatprep.mubr.bf16.mxu0 %v3484_v58  ;;  %v1488_v7 = vrot.slane %v1487_v59, 4  ;;  %v1530_v24 = vrot.slane %v1528_v47, 5  ;;  %v1534_v52 = vrot.slane %v1532_v40, 4  ;;  %v1538_v55 = vshll.u32 %v5129_v45, 16  ;;  %v3461_v58 = vld [vmem:[%s4687_s5 + $0x58] sm:$0xf] }
  0x8b   : > { %4047 = vmatpush3.bf16.msra.mxu0 %v4326_v29  ;;  %v1516_v28 = vrot.slane %v1514_v53, 5  ;;  %v1502_v33 = vrot.slane %v1501_v23, 4  ;;  %v1866_v4 = vsel %vm4903_vm5, %v1864_v39, %v1865_v30  ;;  %v3511_v54 = vrot.slane %v3503_v31, 9  ;;  %v3505_v31 = vld [vmem:[%s4687_s5 + $0x60] sm:$0xe] }
  0x8c   : > { %4079 = vmatpush3.bf16.msra.mxu1 %v4327_v19  ;;  %v1493_v18 = vsel %vm4730_vm2, %v1488_v7, %v1492_v41  ;;  %4048 = vmatprep.subr.bf16.mxu0 %v4328_v63  ;;  %v1510_v19 = vrot.slane %v1508_v15, 4  ;;  %v3534_v50 = vcombine.low %v1863_v37, %v1866_v4  ;;  %v1525_v41 = vor.u32 %v1524_v49, %v1521_v48 }
  0x8d   : > { %4080 = vmatprep.subr.bf16.mxu1 %v4329_v38  ;;  %v3485_v21 = vcombine.low %v1483_v62, %v1493_v18  ;;  %v1507_v43 = vsel %vm4730_vm2, %v1502_v33, %v1506_v6  ;;  %v1535_v59 = vor.u32 %v1534_v52, %v1530_v24  ;;  %v1540_v60 = vrot.slane %v1538_v55, 5 }
  0x8e   : > { %v1511_v29 = vor.u32 %v1510_v19, %v1506_v6  ;;  %v1869_v13 = vrot.slane %v3458_v20, 5  ;;  %v1526_v2 = vrot.slane %v1525_v41, 4  ;;  %v1543_v0 = vshrl.u32 %v3460_v56, 16  ;;  %v4336_v6 = vld [vmem:[%s5786_s1 + $0x188] sm:$0xff]   ;;  %v3464_v20 = vld [vmem:[%s4687_s5 + $0x64] sm:$0xf] }
  0x8f   : > { %4001 = vmatmul.mubr.bf16.gmra.mxu0 %v3485_v21  ;;  %4033 = vmatmul.mubr.bf16.gmra.mxu1 %v3533_v22  ;;  %v1546_v5 = vshll.u32 %v3460_v56, 16  ;;  %v1552_v57 = vshll.u32 %v3461_v58, 16  ;;  %v1536_v7 = vrot.slane %v1535_v59, 4  ;;  %v1556_v15 = vshrl.u32 %v3461_v58, 16 }
  0x90   : > { %4081 = vmatpush3.bf16.msra.mxu1 %v4329_v38  ;;  %4049 = vmatpush3.bf16.msra.mxu0 %v4328_v63  ;;  %v1512_v35 = vrot.slane %v1511_v29, 4  ;;  %v4335_v38 = vld [vmem:[%s5786_s1 + $0x1d0] sm:$0xff]   ;;  %v1872_v63 = vrot.slane %v5129_v45, 5  ;;  %v1870_v11 = vsel %vm4903_vm5, %v3511_v54, %v1869_v13  ;;  %v1871_v12 = vrot.slane %v1869_v13, 4  ;;  %v5175_v45 = vld [vmem:[%s4687_s5 + $0x68] sm:$0x1] }
  0x91   : > { %4082 = vmatprep.subr.bf16.mxu1 %v4331_v1  ;;  %4050 = vmatprep.subr.bf16.mxu0 %v4330_v17  ;;  %v1531_v62 = vsel %vm4730_vm2, %v1526_v2, %v1530_v24  ;;  %v1548_v10 = vrot.slane %v1546_v5, 5  ;;  %v1554_v14 = vrot.slane %v1552_v57, 5  ;;  %v1541_v18 = vsel %vm4730_vm2, %v1536_v7, %v1540_v60  ;;  %v3594_v13 = vld [vmem:[%s4687_s5 + $0x18] sm:$0xf] }
  0x92   : > { %v1517_v51 = vsel %vm4730_vm2, %v1512_v35, %v1516_v28  ;;  %4036 = vmatprep.mubr.bf16.mxu1 %v3534_v50  ;;  %v1873_v25 = vsel %vm4903_vm5, %v1871_v12, %v1872_v63  ;;  %v1558_v19 = vrot.slane %v1556_v15, 4  ;;  %v1562_v53 = vshll.u32 %v3462_v3, 16 }
  0x93   : > { %v3486_v44 = vcombine.low %v1507_v43, %v1517_v51  ;;  %v3487_v21 = vcombine.low %v1531_v62, %v1541_v18  ;;  %v3535_v22 = vcombine.low %v1870_v11, %v1873_v25  ;;  %v3512_v26 = vrot.slane %v3504_v16, 9  ;;  %v4340_v11 = vld [vmem:[%s4687_s5 + $0x18] sm:$0xff]   ;;  %v5221_v18 = vld [vmem:[%s4687_s5 + $0x28] sm:$0xf] }
  0x94   : > { %4083 = vmatpush3.bf16.msra.mxu1 %v4331_v1  ;;  %4051 = vmatpush3.bf16.msra.mxu0 %v4330_v17  ;;  %v4334_v1 = vld [vmem:[%s5786_s1 + $0x190] sm:$0xff]   ;;  %v1545_v17 = vrot.slane %v1543_v0, 4  ;;  %v1559_v29 = vor.u32 %v1558_v19, %v1554_v14  ;;  %v1564_v28 = vrot.slane %v1562_v53, 5  ;;  %v1876_v9 = vrot.slane %v3461_v58, 5 }
  0x95   : > { %4084 = vmatprep.subr.bf16.mxu1 %v4333_v27  ;;  %4004 = vmatprep.mubr.bf16.mxu0 %v3486_v44  ;;  %v1879_v30 = vrot.slane %v3462_v3, 5  ;;  %v1567_v61 = vshrl.u32 %v3463_v8, 16  ;;  %v1570_v34 = vshll.u32 %v3463_v8, 16  ;;  %v1576_v47 = vshll.u32 %v3464_v20, 16 }
  0x96   : > { %4052 = vmatprep.subr.bf16.mxu0 %v4332_v42  ;;  %v1549_v23 = vor.u32 %v1548_v10, %v1545_v17  ;;  %v1560_v35 = vrot.slane %v1559_v29, 4  ;;  %v1877_v37 = vsel %vm4903_vm5, %v3512_v26, %v1876_v9  ;;  %v1878_v39 = vrot.slane %v1876_v9, 4 }
  0x97   : > { %4005 = vmatmul.mubr.bf16.gmra.mxu0 %v3487_v21  ;;  %4037 = vmatmul.mubr.bf16.gmra.mxu1 %v3535_v22  ;;  %v1580_v40 = vshrl.u32 %v3464_v20, 16  ;;  %v1569_v48 = vrot.slane %v1567_v61, 4  ;;  %v1572_v49 = vrot.slane %v1570_v34, 5  ;;  %v1578_v24 = vrot.slane %v1576_v47, 5  ;;  %v4341_v61 = vld [vmem:[%s4687_s5 + $0x24] sm:$0xff]  }
  0x98   : > { %4085 = vmatpush3.bf16.msra.mxu1 %v4333_v27  ;;  %4053 = vmatpush3.bf16.msra.mxu0 %v4332_v42  ;;  %v4339_v27 = vld [vmem:[%s5786_s1 + $0x1c0] sm:$0xff]   ;;  %v1550_v33 = vrot.slane %v1549_v23, 4  ;;  %v1565_v51 = vsel %vm4730_vm2, %v1560_v35, %v1564_v28  ;;  %v1880_v4 = vsel %vm4903_vm5, %v1878_v39, %v1879_v30  ;;  %v1586_v55 = vshll.u32 %v5175_v45, 16 }
  0x99   : > { %4086 = vmatprep.subr.bf16.mxu1 %v4335_v38  ;;  %4054 = vmatprep.subr.bf16.mxu0 %v4334_v1  ;;  %v4338_v42 = vld [vmem:[%s5786_s1 + $0x180] sm:$0xff]   ;;  %v1582_v52 = vrot.slane %v1580_v40, 4  ;;  %v3536_v50 = vcombine.low %v1877_v37, %v1880_v4  ;;  %v1573_v41 = vor.u32 %v1572_v49, %v1569_v48  ;;  %v3513_v54 = vrot.slane %v3505_v31, 9  ;;  %v3600_v40 = vld [vmem:[%s4687_s5 + $0x30] sm:$0xf] }
  0x9a   : > { %v1555_v43 = vsel %vm4730_vm2, %v1550_v33, %v1554_v14  ;;  %v1588_v58 = vrot.slane %v1586_v55, 5  ;;  %v1883_v59 = vrot.slane %v3464_v20, 5  ;;  %v1886_v60 = vrot.slane %v5175_v45, 5  ;;  %v5224_v20 = vld [vmem:[%s4687_s5 + $0x2c] sm:$0x1]  ;;  %v5242_v49 = vld [vmem:[%s5786_s1 + $0x230] sm:$0xff]  }
  0x9b   : > { %v3488_v44 = vcombine.low %v1555_v43, %v1565_v51  ;;  %v1583_v56 = vor.u32 %v1582_v52, %v1578_v24  ;;  %4040 = vmatprep.mubr.bf16.mxu1 %v3536_v50  ;;  %v1574_v63 = vrot.slane %v1573_v41, 4  ;;  %v2366_v2 = vshrl.u32 %v3594_v13, 16 }
  0x9c   : > { %4087 = vmatpush3.bf16.msra.mxu1 %v4335_v38  ;;  %4055 = vmatpush3.bf16.msra.mxu0 %v4334_v1  ;;  %v5191_v38 = vld [vmem:[%s5786_s1 + $0x238] sm:$0xff]   ;;  %v1884_v0 = vsel %vm4903_vm5, %v3513_v54, %v1883_v59  ;;  %v1885_v5 = vrot.slane %v1883_v59, 4  ;;  %v2369_v57 = vshll.u32 %v3594_v13, 16  ;;  %v2403_v29 = vshrl.u32 %v5221_v18, 16 }
  0x9d   : > { %4088 = vmatprep.subr.bf16.mxu1 %v4337_v46  ;;  %4056 = vmatprep.subr.bf16.mxu0 %v4336_v6  ;;  %v5201_v1 = vld [vmem:[%s4687_s5 + $0x1c] sm:$0xf]  ;;  %v1584_v3 = vrot.slane %v1583_v56, 4  ;;  %v1579_v7 = vsel %vm4730_vm2, %v1574_v63, %v1578_v24  ;;  %v2368_v12 = vrot.slane %v2366_v2, 4  ;;  %v2409_v28 = vshll.u32 %v5224_v20, 16 }
  0x9e   : > { %4008 = vmatprep.mubr.bf16.mxu0 %v3488_v44  ;;  %v2375_v15 = vshll.u32 %v5201_v1, 16  ;;  %v2379_v16 = vshrl.u32 %v5201_v1, 16  ;;  %v1887_v17 = vsel %vm4903_vm5, %v1885_v5, %v1886_v60  ;;  %v2371_v10 = vrot.slane %v2369_v57, 5  ;;  %v5245_v24 = vld [vmem:[%s4687_s5 + $0x38] sm:$0x1]  ;;  %v4344_v44 = vld [vmem:[%s4687_s5 + $0x30] sm:$0xff]  }
  0x9f   : > { %v1589_v62 = vsel %vm4730_vm2, %v1584_v3, %v1588_v58  ;;  %v3537_v19 = vcombine.low %v1884_v0, %v1887_v17  ;;  %v2405_v47 = vrot.slane %v2403_v29, 4  ;;  %v2411_v35 = vrot.slane %v2409_v28, 5  ;;  %v3603_v60 = vld [vmem:[%s4687_s5 + $0x3c] sm:$0xf]  ;;  %v5255_v3 = vld [vmem:[%s4687_s5 + $0x40] sm:$0xf] }
  0xa0   : > { %4089 = vmatpush3.bf16.msra.mxu1 %v4337_v46  ;;  %4057 = vmatpush3.bf16.msra.mxu0 %v4336_v6  ;;  %v5204_v46 = vld [vmem:[%s4687_s5 + $0x20] sm:$0x1]  ;;  %v3597_v6 = vld [vmem:[%s4687_s5 + $0x24] sm:$0xf]  ;;  %v3489_v25 = vcombine.low %v1579_v7, %v1589_v62  ;;  %v2377_v53 = vrot.slane %v2375_v15, 5  ;;  %v2381_v8 = vrot.slane %v2379_v16, 4  ;;  %v2372_v21 = vor.u32 %v2371_v10, %v2368_v12 }
  0xa1   : > { %4090 = vmatprep.subr.bf16.mxu1 %v4339_v27  ;;  %4058 = vmatprep.subr.bf16.mxu0 %v4338_v42  ;;  %v2385_v14 = vshll.u32 %v5204_v46, 16  ;;  %v2390_v23 = vshrl.u32 %v3597_v6, 16  ;;  %v2393_v26 = vshll.u32 %v3597_v6, 16  ;;  %v2414_v51 = vshrl.u32 %v3600_v40, 16  ;;  %v5258_v0 = vld [vmem:[%s4687_s5 + $0x44] sm:$0x1] }
  0xa2   : > { %4009 = vmatmul.mubr.bf16.gmra.mxu0 %v3489_v25  ;;  %4041 = vmatmul.mubr.bf16.gmra.mxu1 %v3537_v19  ;;  %v2382_v45 = vor.u32 %v2381_v8, %v2377_v53  ;;  %v2373_v9 = vrot.slane %v2372_v21, 4  ;;  %v2417_v4 = vshll.u32 %v3600_v40, 16  ;;  %v2433_v59 = vshll.u32 %v5245_v24, 16  ;;  %v5265_v12 = vld [vmem:[%s5786_s1 + $0x228] sm:$0xff]  }
  0xa3   : > { %v2387_v22 = vrot.slane %v2385_v14, 5  ;;  %4060 = vmatprep.mubr.bf16.mxu0 %v4340_v11  ;;  %v2392_v30 = vrot.slane %v2390_v23, 4  ;;  %v2395_v31 = vrot.slane %v2393_v26, 5  ;;  %v2416_v56 = vrot.slane %v2414_v51, 4  ;;  %v5279_v29 = vld [vmem:[%s4687_s5 + $0x4c] sm:$0xf] }
  0xa4   : > { %4091 = vmatpush3.bf16.msra.mxu1 %v4339_v27  ;;  %4059 = vmatpush3.bf16.msra.mxu0 %v4338_v42  ;;  %v2399_v27 = vshll.u32 %v5221_v18, 16  ;;  %v2383_v33 = vrot.slane %v2382_v45, 4  ;;  %v2378_v37 = vsel %vm4730_vm2, %v2373_v9, %v2377_v53  ;;  %v5235_v42 = vld [vmem:[%s4687_s5 + $0x34] sm:$0xf]  ;;  %v2419_v58 = vrot.slane %v2417_v4, 5  ;;  %v4345_v53 = vld [vmem:[%s4687_s5 + $0x3c] sm:$0xff]  }
  0xa5   : > { %4140 = vmatprep.subr.bf16.mxu1 %v5191_v38  ;;  %4108 = vmatprep.subr.bf16.mxu0 %v5191_v38  ;;  %v2396_v39 = vor.u32 %v2395_v31, %v2392_v30  ;;  %v2423_v50 = vshll.u32 %v5235_v42, 16  ;;  %v2427_v41 = vshrl.u32 %v5235_v42, 16  ;;  %v2435_v7 = vrot.slane %v2433_v59, 5  ;;  %v4348_v45 = vld [vmem:[%s4687_s5 + $0x48] sm:$0xff]   ;;  %v5291_v30 = vld [vmem:[%s4687_s5 + $0x50] sm:$0x1] }
  0xa6   : > { %v2401_v34 = vrot.slane %v2399_v27, 5  ;;  %v2388_v43 = vsel %vm4730_vm2, %v2383_v33, %v2387_v22  ;;  %v2420_v57 = vor.u32 %v2419_v58, %v2416_v56  ;;  %v2438_v11 = vshrl.u32 %v3603_v60, 16  ;;  %v3606_v27 = vld [vmem:[%s4687_s5 + $0x48] sm:$0xf]  ;;  %v5299_v51 = vld [vmem:[%s4687_s5 + $0x58] sm:$0xf] }
  0xa7   : > { %v3634_v52 = vcombine.low %v2378_v37, %v2388_v43  ;;  %v2397_v55 = vrot.slane %v2396_v39, 4  ;;  %v2425_v63 = vrot.slane %v2423_v50, 5  ;;  %v2429_v2 = vrot.slane %v2427_v41, 4  ;;  %v3609_v37 = vld [vmem:[%s4687_s5 + $0x54] sm:$0xf] }
  0xa8   : > { %v2406_v48 = vor.u32 %v2405_v47, %v2401_v34  ;;  %v2441_v62 = vshll.u32 %v3603_v60, 16  ;;  %v2447_v17 = vshll.u32 %v5255_v3, 16  ;;  %v2421_v10 = vrot.slane %v2420_v57, 4 }
  0xa9   : > { %4092 = vmatprep.mubr.bf16.mxu1 %v3634_v52  ;;  %v2402_v13 = vsel %vm4730_vm2, %v2397_v55, %v2401_v34  ;;  %v2430_v16 = vor.u32 %v2429_v2, %v2425_v63  ;;  %v2440_v14 = vrot.slane %v2438_v11, 4  ;;  %v2451_v6 = vshrl.u32 %v5255_v3, 16  ;;  %v4350_v11 = vld [vmem:[%s5786_s1 + $0x218] sm:$0xff]  }
  0xaa   : > { %v2407_v54 = vrot.slane %v2406_v48, 4  ;;  %4061 = vmatmul.mubr.bf16.vlgmr.msra.gmra.mxu0 %v4341_v61  ;;  %v2457_v25 = vshll.u32 %v5258_v0, 16  ;;  %v2443_v8 = vrot.slane %v2441_v62, 5  ;;  %v2449_v21 = vrot.slane %v2447_v17, 5 }
  0xab   : > { %4109 = vmatpush3.bf16.msra.mxu0 %v5191_v38  ;;  %4064 = vmatprep.mubr.bf16.mxu0 %v4344_v44  ;;  %v2431_v19 = vrot.slane %v2430_v16, 4  ;;  %v2426_v22 = vsel %vm4730_vm2, %v2421_v10, %v2425_v63  ;;  %v2453_v23 = vrot.slane %v2451_v6, 4  ;;  %v2462_v31 = vshrl.u32 %v3606_v27, 16  ;;  %v5303_v44 = vld [vmem:[%s4687_s5 + $0x5c] sm:$0x1] }
  0xac   : > { %v2412_v5 = vsel %vm4730_vm2, %v2407_v54, %v2411_v35  ;;  %4110 = vmatprep.subr.bf16.mxu0 %v5242_v49  ;;  %v2459_v26 = vrot.slane %v2457_v25, 5  ;;  %v2444_v9 = vor.u32 %v2443_v8, %v2440_v14  ;;  %v2465_v33 = vshll.u32 %v3606_v27, 16 }
  0xad   : > { %v3635_v15 = vcombine.low %v2402_v13, %v2412_v5  ;;  %v2436_v28 = vsel %vm4730_vm2, %v2431_v19, %v2435_v7  ;;  %v2454_v34 = vor.u32 %v2453_v23, %v2449_v21  ;;  %v2471_v47 = vshll.u32 %v5279_v29, 16  ;;  %v4349_v5 = vld [vmem:[%s4687_s5 + $0x54] sm:$0xff]   ;;  %v3612_v19 = vld [vmem:[%s4687_s5 + $0x60] sm:$0xf] }
  0xae   : > { %v3636_v61 = vcombine.low %v2426_v22, %v2436_v28  ;;  %v2475_v35 = vshrl.u32 %v5279_v29, 16  ;;  %v2445_v39 = vrot.slane %v2444_v9, 4  ;;  %v2464_v40 = vrot.slane %v2462_v31, 4  ;;  %v4352_v23 = vld [vmem:[%s4687_s5 + $0x60] sm:$0xff]  }
  0xaf   : > { %4093 = vmatmul.mubr.bf16.vlgmr.msra.gmra.mxu1 %v3635_v15  ;;  %4111 = vmatpush3.bf16.msra.mxu0 %v5242_v49  ;;  %v2467_v43 = vrot.slane %v2465_v33, 5  ;;  %v2481_v48 = vshll.u32 %v5291_v30, 16  ;;  %v2455_v4 = vrot.slane %v2454_v34, 4  ;;  %v2473_v52 = vrot.slane %v2471_v47, 5 }
  0xb0   : > { %4148 = vmatpush3.bf16.msra.mxu1 %v5191_v38  ;;  %v5288_v38 = vld [vmem:[%s5786_s1 + $0x220] sm:$0xff]   ;;  %4112 = vmatprep.subr.bf16.mxu0 %v5265_v12  ;;  %v2477_v55 = vrot.slane %v2475_v35, 4  ;;  %v2486_v50 = vshrl.u32 %v3609_v37, 16  ;;  %v2450_v41 = vsel %vm4730_vm2, %v2445_v39, %v2449_v21  ;;  %v2489_v58 = vshll.u32 %v3609_v37, 16  ;;  %v3615_v35 = vld [vmem:[%s4687_s5 + $0x6c] sm:$0xf] }
  0xb1   : > { %4141 = vmatprep.subr.bf16.mxu1 %v5242_v49  ;;  %4096 = vmatprep.mubr.bf16.mxu1 %v3636_v61  ;;  %v2468_v54 = vor.u32 %v2467_v43, %v2464_v40  ;;  %v2483_v56 = vrot.slane %v2481_v48, 5  ;;  %v2495_v13 = vshll.u32 %v5299_v51, 16  ;;  %v2499_v7 = vshrl.u32 %v5299_v51, 16  ;;  %v5353_v43 = vld [vmem:[%s4687_s5 + $0x70] sm:$0xf] }
  0xb2   : > { %4065 = vmatmul.mubr.bf16.gmra.mxu0 %v4345_v53  ;;  %v2478_v59 = vor.u32 %v2477_v55, %v2473_v52  ;;  %v2488_v60 = vrot.slane %v2486_v50, 4  ;;  %v2491_v57 = vrot.slane %v2489_v58, 5  ;;  %v2505_v62 = vshll.u32 %v5303_v44, 16  ;;  %v5332_v53 = vld [vmem:[%s4687_s5 + $0x64] sm:$0xf] }
  0xb3   : > { %4113 = vmatpush3.bf16.msra.mxu0 %v5265_v12  ;;  %4068 = vmatprep.mubr.bf16.mxu0 %v4348_v45  ;;  %v2469_v2 = vrot.slane %v2468_v54, 4  ;;  %v2497_v16 = vrot.slane %v2495_v13, 5  ;;  %v2836_v17 = vrot.slane %v5299_v51, 5  ;;  %v2501_v6 = vrot.slane %v2499_v7, 4  ;;  %v5356_v48 = vld [vmem:[%s4687_s5 + $0x74] sm:$0x1] }
  0xb4   : > { %4149 = vmatpush3.bf16.msra.mxu1 %v5242_v49  ;;  %v2460_v49 = vsel %vm4730_vm2, %v2455_v4, %v2459_v26  ;;  %4114 = vmatprep.subr.bf16.mxu0 %v5288_v38  ;;  %v2479_v15 = vrot.slane %v2478_v59, 4  ;;  %v2492_v14 = vor.u32 %v2491_v57, %v2488_v60  ;;  %v2839_v25 = vrot.slane %v5303_v44, 5  ;;  %v5343_v26 = vld [vmem:[%s4687_s5 + $0x68] sm:$0x1] }
  0xb5   : > { %4142 = vmatprep.subr.bf16.mxu1 %v5265_v12  ;;  %v3637_v63 = vcombine.low %v2450_v41, %v2460_v49  ;;  %v2474_v10 = vsel %vm4730_vm2, %v2469_v2, %v2473_v52  ;;  %v2507_v21 = vrot.slane %v2505_v62, 5  ;;  %v5339_v22 = vrot.slane %v2836_v17, 4 }
  0xb6   : > { %v2484_v8 = vsel %vm4730_vm2, %v2479_v15, %v2483_v56  ;;  %v2510_v45 = vshrl.u32 %v3612_v19, 16  ;;  %v2493_v28 = vrot.slane %v2492_v14, 4  ;;  %v2502_v9 = vor.u32 %v2501_v6, %v2497_v16  ;;  %v3654_v14 = vld [vmem:[%s4687_s5 + $0x48] sm:$0xe] }
  0xb7   : > { %4097 = vmatmul.mubr.bf16.gmra.mxu1 %v3637_v63  ;;  %4115 = vmatpush3.bf16.msra.mxu0 %v5288_v38  ;;  %v3638_v27 = vcombine.low %v2474_v10, %v2484_v8  ;;  %v2513_v31 = vshll.u32 %v3612_v19, 16  ;;  %v2519_v61 = vshll.u32 %v5332_v53, 16  ;;  %v2523_v34 = vshrl.u32 %v5332_v53, 16  ;;  %v3650_v63 = vld [vmem:[%s4687_s5 + $0x18] sm:$0xe] }
  0xb8   : > { %4150 = vmatpush3.bf16.msra.mxu1 %v5265_v12  ;;  %v5328_v12 = vld [vmem:[%s5786_s1 + $0x210] sm:$0xff]   ;;  %4116 = vmatprep.subr.bf16.mxu0 %v4350_v11  ;;  %v2512_v33 = vrot.slane %v2510_v45, 4  ;;  %v2529_v47 = vshll.u32 %v5343_v26, 16  ;;  %v2498_v37 = vsel %vm4730_vm2, %v2493_v28, %v2497_v16  ;;  %v2503_v39 = vrot.slane %v2502_v9, 4  ;;  %v3651_v45 = vld [vmem:[%s4687_s5 + $0x24] sm:$0xe] }
  0xb9   : > { %4143 = vmatprep.subr.bf16.mxu1 %v5288_v38  ;;  %4100 = vmatprep.mubr.bf16.mxu1 %v3638_v27  ;;  %v2515_v40 = vrot.slane %v2513_v31, 5  ;;  %v2521_v4 = vrot.slane %v2519_v61, 5  ;;  %v2525_v52 = vrot.slane %v2523_v34, 4  ;;  %v2534_v50 = vshrl.u32 %v3615_v35, 16  ;;  %v3655_v34 = vld [vmem:[%s4687_s5 + $0x54] sm:$0xe] }
  0xba   : > { %4069 = vmatmul.mubr.bf16.gmra.mxu0 %v4349_v5  ;;  %v2531_v55 = vrot.slane %v2529_v47, 5  ;;  %v2508_v41 = vsel %vm4730_vm2, %v2503_v39, %v2507_v21  ;;  %v2537_v56 = vshll.u32 %v3615_v35, 16  ;;  %v2543_v58 = vshll.u32 %v5353_v43, 16  ;;  %v4353_v5 = vld [vmem:[%s4687_s5 + $0x6c] sm:$0xff]   ;;  %v4355_v21 = vld [vmem:[%s5786_s1 + $0x200] sm:$0xff]  }
  0xbb   : > { %4117 = vmatpush3.bf16.msra.mxu0 %v4350_v11  ;;  %4072 = vmatprep.mubr.bf16.mxu0 %v4352_v23  ;;  %v2516_v54 = vor.u32 %v2515_v40, %v2512_v33  ;;  %v3639_v49 = vcombine.low %v2498_v37, %v2508_v41  ;;  %v2526_v59 = vor.u32 %v2525_v52, %v2521_v4  ;;  %v2536_v60 = vrot.slane %v2534_v50, 4  ;;  %v3652_v39 = vld [vmem:[%s4687_s5 + $0x30] sm:$0xe] }
  0xbc   : > { %4151 = vmatpush3.bf16.msra.mxu1 %v5288_v38  ;;  %v5361_v38 = vld [vmem:[%s5786_s1 + $0x208] sm:$0xff]   ;;  %4118 = vmatprep.subr.bf16.mxu0 %v5328_v12  ;;  %v2547_v13 = vshrl.u32 %v5353_v43, 16  ;;  %v2539_v57 = vrot.slane %v2537_v56, 5  ;;  %v2545_v7 = vrot.slane %v2543_v58, 5  ;;  %v2553_v15 = vshll.u32 %v5356_v48, 16 }
  0xbd   : > { %4144 = vmatprep.subr.bf16.mxu1 %v4350_v11  ;;  %v2517_v2 = vrot.slane %v2516_v54, 4  ;;  %v2527_v16 = vrot.slane %v2526_v59, 4  ;;  %v3658_v62 = vrot.slane %v3650_v63, 9  ;;  %v2801_v10 = vrot.slane %v5201_v1, 5  ;;  %v3656_v59 = vld [vmem:[%s4687_s5 + $0x60] sm:$0xe] }
  0xbe   : > { %v2540_v19 = vor.u32 %v2539_v57, %v2536_v60  ;;  %v2555_v8 = vrot.slane %v2553_v15, 5  ;;  %v2804_v23 = vrot.slane %v5204_v46, 5  ;;  %v3662_v61 = vrot.slane %v3654_v14, 9  ;;  %v3657_v15 = vld [vmem:[%s4687_s5 + $0x6c] sm:$0xe] }
  0xbf   : > { %4101 = vmatmul.mubr.bf16.gmra.mxu1 %v3639_v49  ;;  %4119 = vmatpush3.bf16.msra.mxu0 %v5328_v12  ;;  %v2522_v6 = vsel %vm4730_vm2, %v2517_v2, %v2521_v4  ;;  %v2532_v1 = vsel %vm4730_vm2, %v2527_v16, %v2531_v55  ;;  %v2802_v28 = vsel %vm4903_vm5, %v3658_v62, %v2801_v10  ;;  %v2803_v9 = vrot.slane %v2801_v10, 4 }
  0xc0   : > { %4152 = vmatpush3.bf16.msra.mxu1 %v4350_v11  ;;  %v2549_v11 = vrot.slane %v2547_v13, 4  ;;  %4120 = vmatprep.subr.bf16.mxu0 %v5361_v38  ;;  %v3640_v31 = vcombine.low %v2522_v6, %v2532_v1  ;;  %v2541_v33 = vrot.slane %v2540_v19, 4  ;;  %v2829_v46 = vrot.slane %v5279_v29, 5 }
  0xc1   : > { %4145 = vmatprep.subr.bf16.mxu1 %v5328_v12  ;;  %v2832_v35 = vrot.slane %v5291_v30, 5  ;;  %v3659_v37 = vrot.slane %v3651_v45, 9  ;;  %v2808_v30 = vrot.slane %v5221_v18, 5  ;;  %v2811_v50 = vrot.slane %v5224_v20, 5  ;;  %v3653_v20 = vld [vmem:[%s4687_s5 + $0x3c] sm:$0xe] }
  0xc2   : > { %v2550_v27 = vor.u32 %v2549_v11, %v2545_v7  ;;  %4073 = vmatmul.mubr.bf16.gmra.mxu0 %v4353_v5  ;;  %4104 = vmatprep.mubr.bf16.mxu1 %v3640_v31  ;;  %v2546_v40 = vsel %vm4730_vm2, %v2541_v33, %v2545_v7  ;;  %v2830_v29 = vsel %vm4903_vm5, %v3662_v61, %v2829_v46  ;;  %v2831_v52 = vrot.slane %v2829_v46, 4  ;;  %s193_s5 = sand.u32 1, %s4478_s16  }
  0xc3   : > { %4121 = vmatpush3.bf16.msra.mxu0 %v5361_v38  ;;  %v3663_v41 = vrot.slane %v3655_v34, 9  ;;  %v3660_v58 = vrot.slane %v3652_v39, 9  ;;  %v2815_v49 = vrot.slane %v5235_v42, 5  ;;  %v2810_v60 = vrot.slane %v2808_v30, 4  ;;  %s3303_s23 = sshll.u32 %s193_s5, 7  ;;  %s5678_s30 = scalar_lea.sflag [#allocation3], %s193_s5 }
  0xc4   : > { %4153 = vmatpush3.bf16.msra.mxu1 %v5328_v12  ;;  %v2551_v47 = vrot.slane %v2550_v27, 4  ;;  %v2805_v12 = vsel %vm4903_vm5, %v2803_v9, %v2804_v23  ;;  %4122 = vmatprep.subr.bf16.mxu0 %v4355_v21  ;;  %v2833_v56 = vsel %vm4903_vm5, %v2831_v52, %v2832_v35  ;;  %v2840_v18 = vsel %vm4903_vm5, %v5339_v22, %v2839_v25  ;;  %s5600_s10 = scalar_lea.vmem [#allocation2], %s3303_s23 }
  0xc5   : > { %4146 = vmatprep.subr.bf16.mxu1 %v5361_v38  ;;  %v3682_v4 = vcombine.low %v2802_v28, %v2805_v12  ;;  %v3686_v36 = vcombine.low %v2830_v29, %v2833_v56  ;;  %v2837_v42 = vsel %vm4903_vm5, %v3663_v41, %v2836_v17  ;;  %v2816_v13 = vsel %vm4903_vm5, %v3660_v58, %v2815_v49  ;;  %s3163_s18 = sshll.u32 %s5600_s10, 4  ;;  %s5666_s18 = int_to_ptr.vmem [resolvable:$true] %s3163_s18 }
  0xc6   : > { %v2556_v55 = vsel %vm4730_vm2, %v2551_v47, %v2555_v8  ;;  %v2817_v63 = vrot.slane %v2815_v49, 4  ;;  %v2818_v2 = vrot.slane %v5245_v24, 5  ;;  %v2812_v44 = vsel %vm4903_vm5, %v2810_v60, %v2811_v50  ;;  %s4356_s21 = scalar_lea.vmem %s5666_s18, 2048  ;;  %p4363_p10 = scmp.lt.s32.totalorder %s5666_s18, %s4361_s9 }
  0xc7   : > { %v3641_v54 = vcombine.low %v2546_v40, %v2556_v55  ;;  %4124 = vmatprep.mubr.bf16.mxu0 %v3682_v4  ;;  %4123 = vmatpush3.bf16.msra.mxu0 %v4355_v21  ;;  %v3664_v25 = vrot.slane %v3656_v59, 9  ;;  %v2843_v22 = vrot.slane %v5332_v53, 5  ;;  %v2846_v5 = vrot.slane %v5343_v26, 5  ;;  %p4357_p6 = scmp.ne.s32.totalorder %s5666_s18, %s4356_s21  ;;  %p4364_p11 = scmp.lt.s32.totalorder %s4362_s11, %s4356_s21 }
  0xc8   : > { %4154 = vmatpush3.bf16.msra.mxu1 %v5361_v38  ;;  %v2809_v38 = vsel %vm4903_vm5, %v3659_v37, %v2808_v30  ;;  %v2819_v17 = vsel %vm4903_vm5, %v2817_v63, %v2818_v2  ;;  %v3661_v57 = vrot.slane %v3653_v20, 9  ;;  %v2822_v7 = vrot.slane %v5255_v3, 5 }
  0xc9   : > { %4147 = vmatprep.subr.bf16.mxu1 %v4355_v21  ;;  %4105 = vmatmul.mubr.bf16.gmra.mxu1 %v3641_v54  ;;  %v3683_v51 = vcombine.low %v2809_v38, %v2812_v44  ;;  %v3684_v16 = vcombine.low %v2816_v13, %v2819_v17  ;;  %v2844_v24 = vsel %vm4903_vm5, %v3664_v25, %v2843_v22  ;;  %v2845_v11 = vrot.slane %v2843_v22, 4  ;;  %p4358_p8 = pnand %p4357_p6, %p4603_p5  ;;  %p4365_p12 = por %p4364_p11, %p4363_p10 }
  0xca   : > { %4132 = vmatprep.mubr.bf16.mxu1 %v3686_v36  ;;  %v2825_v62 = vrot.slane %v5258_v0, 5  ;;  %v3687_v10 = vcombine.low %v2837_v42, %v2840_v18  ;;  %v2824_v53 = vrot.slane %v2822_v7, 4  ;;  %v2850_v26 = vrot.slane %v5353_v43, 5 }
  0xcb   : > { %4125 = vmatmul.mubr.bf16.vlgmr.msra.gmra.mxu0 %v3683_v51  ;;  %v2847_v14 = vsel %vm4903_vm5, %v2845_v11, %v2846_v5  ;;  %v2823_v3 = vsel %vm4903_vm5, %v3661_v57, %v2822_v7  ;;  %v3665_v6 = vrot.slane %v3657_v15, 9  ;;  %v2853_v19 = vrot.slane %v5356_v48, 5  ;;  %p4359_p9 = pneg %p4358_p8 }
  0xcc   : > { %4155 = vmatpush3.bf16.msra.mxu1 %v4355_v21  ;;  %4128 = vmatprep.mubr.bf16.mxu0 %v3684_v16  ;;  %v3688_v8 = vcombine.low %v2844_v24, %v2847_v14  ;;  %v2826_v21 = vsel %vm4903_vm5, %v2824_v53, %v2825_v62  ;;  %v2852_v0 = vrot.slane %v2850_v26, 4 }
  0xcd   : > { %v3685_v23 = vcombine.low %v2823_v3, %v2826_v21  ;;  %v2851_v43 = vsel %vm4903_vm5, %v3665_v6, %v2850_v26  ;;  %p4366_p13 = pnand %p4365_p12, %p4359_p9 }
  0xce   : > { %v2854_v45 = vsel %vm4903_vm5, %v2852_v0, %v2853_v19 }
  0xcf   : > { %v3689_v1 = vcombine.low %v2851_v43, %v2854_v45 }
  0xd1   : > { %4133 = vmatmul.mubr.bf16.vlgmr.msra.gmra.mxu1 %v3687_v10 }
  0xd2   : > { %4136 = vmatprep.mubr.bf16.mxu1 %v3688_v8 }
  0xd3   : > { %4129 = vmatmul.mubr.bf16.gmra.mxu0 %v3685_v23 }
  0xd9   : > { %4137 = vmatmul.mubr.bf16.gmra.mxu1 %v3689_v1 }
 0x106   : > { %v3870_v27 = vpop.f32.mrf.mxu0 }
 0x107   : > { %v3902_v28 = vpop.f32.mrf.mxu1 }
 0x108   : > { %v784_v48 = vadd.f32 %v3902_v28, %v3870_v27  ;;  %v582_v9 = vpop.f32.mrf.mxu0 }
 0x109   : > { %v775_v31 = vpop.f32.mrf.mxu1 }
 0x10a   : > { %v776_v33 = vadd.f32 %v775_v31, %v582_v9  ;;  %v3871_v61 = vpop.f32.mrf.mxu0 }
 0x10b   : > { %v3903_v46 = vpop.f32.mrf.mxu1 }
 0x10c   : > { %v787_v34 = vadd.f32 %v3903_v46, %v3871_v61  ;;  %v585_v47 = vpop.f32.mrf.mxu0 }
 0x10d   : > { %v778_v12 = vpop.f32.mrf.mxu1 }
 0x10e   : > { %v779_v35 = vadd.f32 %v778_v12, %v585_v47  ;;  %v3874_v37 = vpop.f32.mrf.mxu0 }
 0x10f   : > { %v3906_v39 = vpop.f32.mrf.mxu1 }
 0x110   : > { %v800_v40 = vadd.f32 %v3906_v39, %v3874_v37  ;;  %v598_v32 = vpop.f32.mrf.mxu0 }
 0x111   : > { %v791_v4 = vpop.f32.mrf.mxu1 }
 0x112   : > { %v792_v29 = vadd.f32 %v791_v4, %v598_v32  ;;  %v3875_v52 = vpop.f32.mrf.mxu0 }
 0x113   : > { %v3907_v55 = vpop.f32.mrf.mxu1 }
 0x114   : > { %v803_v30 = vadd.f32 %v3907_v55, %v3875_v52  ;;  %v601_v50 = vpop.f32.mrf.mxu0 }
 0x115   : > { %v794_v41 = vpop.f32.mrf.mxu1 }
 0x116   : > { %v795_v54 = vadd.f32 %v794_v41, %v601_v50  ;;  %v3878_v58 = vpop.f32.mrf.mxu0 }
 0x117   : > { %v3910_v56 = vpop.f32.mrf.mxu1 }
 0x118   : > { %v816_v59 = vadd.f32 %v3910_v56, %v3878_v58  ;;  %v614_v36 = vpop.f32.mrf.mxu0 }
 0x119   : > { %v807_v49 = vpop.f32.mrf.mxu1 }
 0x11a   : > { %v808_v60 = vadd.f32 %v807_v49, %v614_v36  ;;  %v3879_v18 = vpop.f32.mrf.mxu0 }
 0x11b   : > { %v3911_v38 = vpop.f32.mrf.mxu1 }
 0x11c   : > { %v819_v42 = vadd.f32 %v3911_v38, %v3879_v18  ;;  %v617_v13 = vpop.f32.mrf.mxu0 }
 0x11d   : > { %v810_v20 = vpop.f32.mrf.mxu1 }
 0x11e   : > { %v811_v2 = vadd.f32 %v810_v20, %v617_v13  ;;  %v3882_v25 = vpop.f32.mrf.mxu0 }
 0x11f   : > { %v3914_v63 = vpop.f32.mrf.mxu1 }
 0x120   : > { %v832_v5 = vadd.f32 %v3914_v63, %v3882_v25  ;;  %v630_v51 = vpop.f32.mrf.mxu0 }
 0x121   : > { %v823_v44 = vpop.f32.mrf.mxu1 }
 0x122   : > { %v824_v57 = vadd.f32 %v823_v44, %v630_v51  ;;  %v3883_v7 = vpop.f32.mrf.mxu0 }
 0x123   : > { %v3915_v22 = vpop.f32.mrf.mxu1 }
 0x124   : > { %v835_v16 = vadd.f32 %v3915_v22, %v3883_v7  ;;  %v633_v24 = vpop.f32.mrf.mxu0 }
 0x125   : > { %v826_v17 = vpop.f32.mrf.mxu1 }
 0x126   : > { %v5447_v62 = vadd.f32 %v826_v17, %v633_v24  ;;  %v3934_v10 = vpop.f32.mrf.mxu0 }
 0x127   : > { %v3966_v15 = vpop.f32.mrf.mxu1  ;;  %v1117_v26 = vadd.f32 %v3934_v10, %v784_v48 }
 0x128   : > { %v1052_v14 = vpop.f32.mrf.mxu0 }
 0x129   : > { %v1295_v11 = vpop.f32.mrf.mxu1  ;;  %v5449_v6 = vadd.f32 %v3966_v15, %v1117_v26  ;;  %v1115_v19 = vadd.f32 %v1052_v14, %v776_v33 }
 0x12a   : > { %v3935_v8 = vpop.f32.mrf.mxu0 }
 0x12b   : > { %v3967_v53 = vpop.f32.mrf.mxu1  ;;  %v5451_v0 = vadd.f32 %v1295_v11, %v1115_v19  ;;  %v1118_v23 = vadd.f32 %v3935_v8, %v787_v34 }
 0x12c   : > { %v1055_v43 = vpop.f32.mrf.mxu0 }
 0x12d   : > { %v1298_v3 = vpop.f32.mrf.mxu1  ;;  %v5453_v1 = vadd.f32 %v3967_v53, %v1118_v23  ;;  %v1116_v27 = vadd.f32 %v1055_v43, %v779_v35 }
 0x12e   : > { %v3938_v28 = vpop.f32.mrf.mxu0 }
 0x12f   : > { %v3970_v21 = vpop.f32.mrf.mxu1  ;;  %v5455_v31 = vadd.f32 %v1298_v3, %v1116_v27  ;;  %v1121_v48 = vadd.f32 %v3938_v28, %v800_v40 }
 0x130   : > { %v1068_v61 = vpop.f32.mrf.mxu0 }
 0x131   : > { %v1311_v45 = vpop.f32.mrf.mxu1  ;;  %v5457_v47 = vadd.f32 %v3970_v21, %v1121_v48  ;;  %v1119_v33 = vadd.f32 %v1068_v61, %v792_v29 }
 0x132   : > { %v3939_v12 = vpop.f32.mrf.mxu0 }
 0x133   : > { %v3971_v9 = vpop.f32.mrf.mxu1  ;;  %v5459_v39 = vadd.f32 %v1311_v45, %v1119_v33  ;;  %v1122_v34 = vadd.f32 %v3939_v12, %v803_v30 }
 0x134   : > { %v1071_v32 = vpop.f32.mrf.mxu0 }
 0x135   : > { %v1314_v46 = vpop.f32.mrf.mxu1  ;;  %v5461_v52 = vadd.f32 %v3971_v9, %v1122_v34  ;;  %v1120_v35 = vadd.f32 %v1071_v32, %v795_v54 }
 0x136   : > { %v3942_v55 = vpop.f32.mrf.mxu0 }
 0x137   : > { %v3974_v37 = vpop.f32.mrf.mxu1  ;;  %v5463_v41 = vadd.f32 %v1314_v46, %v1120_v35  ;;  %v1125_v40 = vadd.f32 %v3942_v55, %v816_v59 }
 0x138   : > { %v1084_v56 = vpop.f32.mrf.mxu0 }
 0x139   : > { %v1327_v4 = vpop.f32.mrf.mxu1  ;;  %v5465_v49 = vadd.f32 %v3974_v37, %v1125_v40  ;;  %v1123_v29 = vadd.f32 %v1084_v56, %v808_v60 }
 0x13a   : > { %v3943_v36 = vpop.f32.mrf.mxu0 }
 0x13b   : > { %v3975_v50 = vpop.f32.mrf.mxu1  ;;  %v5467_v18 = vadd.f32 %v1327_v4, %v1123_v29  ;;  %v1126_v30 = vadd.f32 %v3943_v36, %v819_v42 }
 0x13c   : > { %v1087_v20 = vpop.f32.mrf.mxu0 }
 0x13d   : > { %v1330_v58 = vpop.f32.mrf.mxu1  ;;  %v5469_v63 = vadd.f32 %v3975_v50, %v1126_v30  ;;  %v1124_v54 = vadd.f32 %v1087_v20, %v811_v2 }
 0x13e   : > { %v3946_v44 = vpop.f32.mrf.mxu0 }
 0x13f   : > { %v3978_v38 = vpop.f32.mrf.mxu1  ;;  %v5471_v22 = vadd.f32 %v1330_v58, %v1124_v54  ;;  %v1129_v59 = vadd.f32 %v3946_v44, %v832_v5 }
 0x140   : > { %v1100_v51 = vpop.f32.mrf.mxu0 }
 0x141   : > { %v1343_v13 = vpop.f32.mrf.mxu1  ;;  %v5473_v7 = vadd.f32 %v3978_v38, %v1129_v59  ;;  %v1127_v60 = vadd.f32 %v1100_v51, %v824_v57 }
 0x142   : > { %v3947_v15 = vpop.f32.mrf.mxu0 }
 0x143   : > { %v3979_v25 = vpop.f32.mrf.mxu1  ;;  %v5477_v11 = vadd.f32 %v1343_v13, %v1127_v60  ;;  %v1130_v42 = vadd.f32 %v3947_v15, %v835_v16 }
 0x144   : > { %v1103_v10 = vpop.f32.mrf.mxu0 }
 0x145   : > { %v1346_v17 = vpop.f32.mrf.mxu1  ;;  %v5481_v2 = vadd.f32 %v3979_v25, %v1130_v42  ;;  %v1128_v26 = vadd.f32 %v1103_v10, %v5447_v62 }
 0x146   : > { %v3998_v14 = vpop.f32.mrf.mxu0 }
 0x147   : > { %v5475_v24 = vpop.f32.mrf.mxu1  ;;  %v5484_v5 = vadd.f32 %v1346_v17, %v1128_v26 }
 0x148   : > { %v1721_v19 = vpop.f32.mrf.mxu0 }
 0x149   : > { %v5479_v53 = vpop.f32.mrf.mxu1 }
 0x14a   : > { %v3999_v57 = vpop.f32.mrf.mxu0 }
 0x14b   : > { %v5486_v3 = vpop.f32.mrf.mxu1 }
 0x14c   : > { %v1724_v21 = vpop.f32.mrf.mxu0 }
 0x14d   : > { %v5488_v8 = vpop.f32.mrf.mxu1 }
 0x14f   : > { %v4002_v23 = vpop.f32.mrf.mxu0  ;;  %v5490_v43 = vpop.f32.mrf.mxu1 }
 0x151   : > { %v1737_v16 = vpop.f32.mrf.mxu0  ;;  %v5492_v45 = vpop.f32.mrf.mxu1 }
 0x153   : > { %v4003_v27 = vpop.f32.mrf.mxu0  ;;  %v5494_v28 = vpop.f32.mrf.mxu1 }
 0x155   : > { %v5496_v62 = vpop.f32.mrf.mxu0  ;;  %v5498_v9 = vpop.f32.mrf.mxu1 }
 0x156   : > { %5809 = vst [vmem:[#allocation13_spill] sm:$0xff] %v5498_v9 }
 0x157   : > { %v4006_v48 = vpop.f32.mrf.mxu0  ;;  %v4038_v61 = vpop.f32.mrf.mxu1 }
 0x159   : > { %v1753_v46 = vpop.f32.mrf.mxu0  ;;  %v5500_v33 = vpop.f32.mrf.mxu1 }
 0x15b   : > { %v4007_v12 = vpop.f32.mrf.mxu0  ;;  %v5502_v37 = vpop.f32.mrf.mxu1 }
 0x15d   : > { %v1756_v34 = vpop.f32.mrf.mxu0  ;;  %v5504_v32 = vpop.f32.mrf.mxu1 }
 0x162   : > { %v5506_v4 = vpop.f32.mrf.mxu0  ;;  %v5508_v35 = vpop.f32.mrf.mxu1 }
 0x163   : > { %5810 = vst [vmem:[#allocation14_spill] sm:$0xff] %v5508_v35 }
 0x164   : > { %v5510_v55 = vpop.f32.mrf.mxu0  ;;  %v5512_v50 = vpop.f32.mrf.mxu1 }
 0x165   : > { %5811 = vst [vmem:[#allocation15_spill] sm:$0xff] %v5512_v50 }
 0x166   : > { %v5514_v40 = vpop.f32.mrf.mxu0  ;;  %v5516_v56 = vpop.f32.mrf.mxu1 }
 0x167   : > { %5812 = vst [vmem:[#allocation16_spill] sm:$0xff] %v5516_v56 }
 0x168   : > { %v5518_v58 = vpop.f32.mrf.mxu0  ;;  %v5520_v29 = vpop.f32.mrf.mxu1 }
 0x169   : > { %5813 = vst [vmem:[#allocation17_spill] sm:$0xff] %v5520_v29 }
 0x16a   : > { %v4062_v36 = vpop.f32.mrf.mxu0 }
 0x16c   : > { %v2262_v38 = vpop.f32.mrf.mxu0 }
 0x16e   : > { %v4063_v20 = vpop.f32.mrf.mxu0 }
 0x16f   : > { %v4094_v30 = vpop.f32.mrf.mxu1 }
 0x170   : > { %v2265_v54 = vpop.f32.mrf.mxu0 }
 0x171   : > { %v2688_v13 = vpop.f32.mrf.mxu1 }
 0x172   : > { %v5526_v59 = vpop.f32.mrf.mxu0 }
 0x173   : > { %v5522_v44 = vpop.f32.mrf.mxu1  ;;  %5816 = vst [vmem:[#allocation20_spill] sm:$0xff] %v5526_v59  ;;  %v1794_v59 = vadd.f32 %v4006_v48, %v5465_v49  ;;  %v1795_v48 = vadd.f32 %v4007_v12, %v5469_v63 }
 0x174   : > { %5814 = vst [vmem:[#allocation18_spill] sm:$0xff] %v5522_v44  ;;  %v5528_v51 = vpop.f32.mrf.mxu0 }
 0x175   : > { %v5524_v25 = vpop.f32.mrf.mxu1  ;;  %5817 = vst [vmem:[#allocation21_spill] sm:$0xff] %v5528_v51  ;;  %v1786_v51 = vadd.f32 %v3998_v14, %v5449_v6  ;;  %v1785_v6 = vadd.f32 %v1724_v21, %v5455_v31  ;;  %v1790_v14 = vadd.f32 %v4002_v23, %v5457_v47  ;;  %v1793_v31 = vadd.f32 %v1756_v34, %v5471_v22 }
 0x176   : > { %5815 = vst [vmem:[#allocation19_spill] sm:$0xff] %v5524_v25  ;;  %v5532_v60 = vpop.f32.mrf.mxu0  ;;  %v2093_v12 = vadd.f32 %v5502_v37, %v1795_v48 }
 0x177   : > { %v5530_v17 = vpop.f32.mrf.mxu1  ;;  %5819 = vst [vmem:[#allocation23_spill] sm:$0xff] %v5532_v60  ;;  %v1784_v60 = vadd.f32 %v1721_v19, %v5451_v0  ;;  %v1791_v19 = vadd.f32 %v4003_v27, %v5461_v52  ;;  %v2088_v52 = vadd.f32 %v5490_v43, %v1790_v14  ;;  %v1798_v43 = vadd.f32 %v5506_v4, %v5473_v7 }
 0x178   : > { %5818 = vst [vmem:[#allocation22_spill] sm:$0xff] %v5530_v17  ;;  %v5536_v42 = vpop.f32.mrf.mxu0 }
 0x179   : > { %v5534_v15 = vpop.f32.mrf.mxu1  ;;  %5821 = vst [vmem:[#allocation25_spill] sm:$0xff] %v5536_v42  ;;  %v2089_v63 = vadd.f32 %v5494_v28, %v1791_v19 }
 0x17a   : > { %5820 = vst [vmem:[#allocation24_spill] sm:$0xff] %v5534_v15  ;;  %v4070_v26 = vpop.f32.mrf.mxu0  ;;  %v5826_v4 = vld [vmem:[#allocation20_spill] sm:$0xff] }
 0x17b   : > { %v5538_v10 = vpop.f32.mrf.mxu1  ;;  %v5825_v37 = vld [vmem:[#allocation18_spill] sm:$0xff] }
 0x17c   : > { %5822 = vst [vmem:[#allocation26_spill] sm:$0xff] %v5538_v10  ;;  %v2294_v56 = vpop.f32.mrf.mxu0  ;;  %v1787_v10 = vadd.f32 %v3999_v57, %v5453_v1  ;;  %v2082_v1 = vadd.f32 %v5479_v53, %v1784_v60  ;;  %v2083_v53 = vadd.f32 %v5488_v8, %v1785_v6  ;;  %v2091_v8 = vadd.f32 %v5504_v32, %v1793_v31  ;;  %v5831_v6 = vld [vmem:[#allocation15_spill] sm:$0xff] }
 0x17d   : > { %v5540_v29 = vpop.f32.mrf.mxu1  ;;  %v5830_v60 = vld [vmem:[#allocation19_spill] sm:$0xff] }
 0x17e   : > { %5823 = vst [vmem:[#allocation27_spill] sm:$0xff] %v5540_v29  ;;  %v4071_v50 = vpop.f32.mrf.mxu0  ;;  %v2084_v29 = vadd.f32 %v5475_v24, %v1786_v51  ;;  %v1792_v24 = vadd.f32 %v1753_v46, %v5467_v18  ;;  %v2085_v49 = vadd.f32 %v5486_v3, %v1787_v10  ;;  %v2325_v23 = vadd.f32 %v2262_v38, %v2082_v1  ;;  %v5832_v1 = vld [vmem:[#allocation16_spill] sm:$0xff] }
 0x17f   : > { %v4102_v25 = vpop.f32.mrf.mxu1 }
 0x180   : > { %v2297_v35 = vpop.f32.mrf.mxu0  ;;  %v2327_v57 = vadd.f32 %v4062_v36, %v2084_v29  ;;  %v2090_v22 = vadd.f32 %v5500_v33, %v1792_v24  ;;  %v2751_v29 = vadd.f32 %v2688_v13, %v2325_v23  ;;  %v2326_v36 = vadd.f32 %v2265_v54, %v2083_v53  ;;  %v5833_v24 = vld [vmem:[#allocation17_spill] sm:$0xff] }
 0x181   : > { %v5543_v9 = vpop.f32.mrf.mxu1  ;;  %v1796_v33 = vadd.f32 %v5510_v55, %v5477_v11  ;;  %v2336_v54 = vadd.f32 %v4071_v50, %v2093_v12  ;;  %v5827_v55 = vld [vmem:[#allocation13_spill] sm:$0xff] }
 0x182   : > { %v5545_v17 = vpop.f32.mrf.mxu0  ;;  %v2753_v27 = vadd.f32 %v4094_v30, %v2327_v57  ;;  %v2333_v28 = vadd.f32 %v2294_v56, %v2090_v22  ;;  %v5837_v22 = vld [vmem:[#allocation23_spill] sm:$0xff] }
 0x183   : > { %5824 = vst [vmem:[#allocation28_spill] sm:$0xff] %v5545_v17  ;;  %v5548_v15 = vpop.f32.mrf.mxu1  ;;  %v1788_v17 = vadd.f32 %v1737_v16, %v5459_v39  ;;  %v2092_v39 = vadd.f32 %v4038_v61, %v1794_v59  ;;  %v2328_v16 = vadd.f32 %v4063_v20, %v2085_v49  ;;  %v1789_v61 = vadd.f32 %v5496_v62, %v5463_v41 }
 0x184   : > { %v5551_v42 = vpop.f32.mrf.mxu0  ;;  %v1799_v41 = vadd.f32 %v5514_v40, %v5481_v2  ;;  %v1797_v62 = vadd.f32 %v5518_v58, %v5484_v5  ;;  %v2331_v20 = vadd.f32 %v5826_v4, %v2088_v52  ;;  %v5828_v40 = vld [vmem:[#allocation14_spill] sm:$0xff]  ;;  %v5829_v5 = vld [vmem:[#allocation21_spill] sm:$0xff]  ;;  %v2334_v59 = vadd.f32 %v2297_v35, %v2091_v8 }
 0x185   : > { %v5555_v44 = vpop.f32.mrf.mxu1  ;;  %v2086_v18 = vadd.f32 %v5492_v45, %v1788_v17  ;;  %v2335_v46 = vadd.f32 %v4070_v26, %v2092_v39  ;;  %v2754_v32 = vadd.f32 %v5825_v37, %v2328_v16  ;;  %v2087_v2 = vadd.f32 %v5827_v55, %v1789_v61  ;;  %v5835_v39 = vld [vmem:[#allocation22_spill] sm:$0xff] }
 0x186   : > { %v5560_v0 = vpop.f32.mrf.mxu0  ;;  %v2096_v56 = vadd.f32 %v5828_v40, %v1798_v43  ;;  %v2759_v50 = vadd.f32 %v5543_v9, %v2333_v28  ;;  %v2094_v14 = vadd.f32 %v5831_v6, %v1796_v33  ;;  %v2097_v19 = vadd.f32 %v5832_v1, %v1799_v41  ;;  %v5839_v4 = vld [vmem:[#allocation26_spill] sm:$0xff] }
 0x187   : > { %v2761_v13 = vadd.f32 %v4102_v25, %v2335_v46  ;;  %v2329_v58 = vadd.f32 %v5829_v5, %v2086_v18  ;;  %v2752_v25 = vadd.f32 %v5830_v60, %v2326_v36  ;;  %v2095_v57 = vadd.f32 %v5833_v24, %v1797_v62  ;;  %v5836_v18 = vld [vmem:[#allocation24_spill] sm:$0xff]  ;;  %v5838_v36 = vld [vmem:[#allocation25_spill] sm:$0xff] }
 0x188   : > { %v5571_v47 = vpop.f32.mrf.mxu0  ;;  %v2757_v23 = vadd.f32 %v5835_v39, %v2331_v20  ;;  %v2762_v9 = vadd.f32 %v5548_v15, %v2336_v54  ;;  %v2760_v46 = vadd.f32 %v5555_v44, %v2334_v59  ;;  %v2337_v61 = vadd.f32 %v5551_v42, %v2094_v14 }
 0x189   : > { %v5569_v21 = vpop.f32.mrf.mxu1  ;;  %v2755_v16 = vadd.f32 %v5836_v18, %v2329_v58  ;;  %v2330_v28 = vadd.f32 %v5838_v36, %v2087_v2  ;;  %v2340_v44 = vadd.f32 %v5560_v0, %v2097_v19  ;;  %v2338_v0 = vadd.f32 %v5571_v47, %v2095_v57 }
 0x18a   : > { %v5834_v49 = vld [vmem:[#allocation28_spill] sm:$0xff] }
 0x18b   : > { %v5578_v3 = vpop.f32.mrf.mxu1  ;;  %v4126_v34 = vpop.f32.mrf.mxu0  ;;  %v2339_v35 = vadd.f32 %v5834_v49, %v2096_v56  ;;  %v5840_v56 = vld [vmem:[#allocation27_spill] sm:$0xff] }
 0x18c   : > { %v3051_v38 = vadd.f32 %v4126_v34, %v2753_v27  ;;  %v2332_v27 = vadd.f32 %v5837_v22, %v2089_v63 }
 0x18d   : > { %v5588_v45 = vpop.f32.mrf.mxu1  ;;  %v2986_v7 = vpop.f32.mrf.mxu0  ;;  %v2765_v63 = vadd.f32 %v5569_v21, %v2339_v35  ;;  %v2763_v21 = vadd.f32 %v5578_v3, %v2337_v61  ;;  %v2756_v3 = vadd.f32 %v5840_v56, %v2330_v28 }
 0x18e   : > { %3067 = vst [vmem:[%s5600_s10 + $0x10] sm:$0xff] %v3051_v38  ;;  %v3049_v11 = vadd.f32 %v2986_v7, %v2751_v29  ;;  %v3104_v62 = vmul.f32 %v3051_v38, %v3051_v38  ;;  %v2758_v20 = vadd.f32 %v5839_v4, %v2332_v27  ;;  %v2766_v47 = vadd.f32 %v5588_v45, %v2340_v44 }
 0x18f   : > { %v5597_v30 = vpop.f32.mrf.mxu1  ;;  %v4127_v17 = vpop.f32.mrf.mxu0 }
 0x190   : > { %3065 = vst [vmem:[%s5600_s10] sm:$0xff] %v3049_v11  ;;  %v3052_v26 = vadd.f32 %v4127_v17, %v2754_v32  ;;  %v3102_v43 = vmul.f32 %v3049_v11, %v3049_v11  ;;  %v2764_v45 = vadd.f32 %v5597_v30, %v2338_v0 }
 0x191   : > { %v4134_v51 = vpop.f32.mrf.mxu1  ;;  %v2989_v31 = vpop.f32.mrf.mxu0 }
 0x192   : > { %v5608_v10 = vadd.f32 %v4134_v51, %v2761_v13  ;;  %3068 = vst [vmem:[%s5600_s10 + $0x18] sm:$0xff] %v3052_v26  ;;  %v3050_v52 = vadd.f32 %v2989_v31, %v2752_v25  ;;  %v3105_v55 = vmul.f32 %v3052_v26, %v3052_v26 }
 0x193   : > { %v3018_v48 = vpop.f32.mrf.mxu1  ;;  %v4130_v8 = vpop.f32.mrf.mxu0 }
 0x194   : > { %3075 = vst [vmem:[%s5600_s10 + $0x50] sm:$0xff] %v5608_v10  ;;  %v5619_v53 = vadd.f32 %v3018_v48, %v2759_v50  ;;  %3066 = vst [vmem:[%s5600_s10 + $0x8] sm:$0xff] %v3050_v52  ;;  %v3081_v34 = vadd.f32 %v3050_v52, %v3049_v11  ;;  %v3103_v29 = vmul.f32 %v3050_v52, %v3050_v52 }
 0x195   : > { %v4135_v12 = vpop.f32.mrf.mxu1  ;;  %v3055_v42 = vadd.f32 %v4130_v8, %v2757_v23  ;;  %v3002_v41 = vpop.f32.mrf.mxu0 }
 0x196   : > { %3073 = vst [vmem:[%s5600_s10 + $0x40] sm:$0xff] %v5619_v53  ;;  %v5628_v15 = vadd.f32 %v4135_v12, %v2762_v9  ;;  %v3082_v37 = vadd.f32 %v3081_v34, %v3051_v38  ;;  %v3118_v32 = vadd.f32 %v3103_v29, %v3102_v43  ;;  %v3053_v54 = vadd.f32 %v3002_v41, %v2755_v16 }
 0x197   : > { %v3021_v33 = vpop.f32.mrf.mxu1  ;;  %3071 = vst [vmem:[%s5600_s10 + $0x30] sm:$0xff] %v3055_v42  ;;  %v4131_v11 = vpop.f32.mrf.mxu0  ;;  %v3108_v30 = vmul.f32 %v3055_v42, %v3055_v42 }
 0x198   : > { %3076 = vst [vmem:[%s5600_s10 + $0x58] sm:$0xff] %v5628_v15  ;;  %v5637_v7 = vadd.f32 %v3021_v33, %v2760_v46  ;;  %v3119_v2 = vadd.f32 %v3118_v32, %v3104_v62  ;;  %v3083_v40 = vadd.f32 %v3082_v37, %v3052_v26  ;;  %3069 = vst [vmem:[%s5600_s10 + $0x20] sm:$0xff] %v3053_v54 }
 0x199   : > { %v4138_v13 = vpop.f32.mrf.mxu1  ;;  %v3056_v58 = vadd.f32 %v4131_v11, %v2758_v20  ;;  %v3005_v59 = vpop.f32.mrf.mxu0  ;;  %v3106_v17 = vmul.f32 %v3053_v54, %v3053_v54 }
 0x19a   : > { %3074 = vst [vmem:[%s5600_s10 + $0x48] sm:$0xff] %v5637_v7  ;;  %v5645_v38 = vadd.f32 %v4138_v13, %v2765_v63  ;;  %v3084_v51 = vadd.f32 %v3083_v40, %v3053_v54  ;;  %v3120_v60 = vadd.f32 %v3119_v2, %v3105_v55  ;;  %v3054_v26 = vadd.f32 %v3005_v59, %v2756_v3 }
 0x19b   : > { %v3034_v5 = vpop.f32.mrf.mxu1  ;;  %3072 = vst [vmem:[%s5600_s10 + $0x38] sm:$0xff] %v3056_v58  ;;  %v3109_v48 = vmul.f32 %v3056_v58, %v3056_v58 }
 0x19c   : > { %3079 = vst [vmem:[%s5600_s10 + $0x70] sm:$0xff] %v5645_v38  ;;  %v5655_v25 = vadd.f32 %v3034_v5, %v2763_v21  ;;  %v3121_v6 = vadd.f32 %v3120_v60, %v3106_v17  ;;  %3070 = vst [vmem:[%s5600_s10 + $0x28] sm:$0xff] %v3054_v26  ;;  %v3085_v1 = vadd.f32 %v3084_v51, %v3054_v26 }
 0x19d   : > { %v4139_v50 = vpop.f32.mrf.mxu1  ;;  %v3107_v19 = vmul.f32 %v3054_v26, %v3054_v26 }
 0x19e   : > { %3077 = vst [vmem:[%s5600_s10 + $0x60] sm:$0xff] %v5655_v25  ;;  %v5663_v14 = vadd.f32 %v4139_v50, %v2766_v47  ;;  %v3086_v49 = vadd.f32 %v3085_v1, %v3055_v42 }
 0x19f   : > { %v3037_v24 = vpop.f32.mrf.mxu1  ;;  %v3122_v35 = vadd.f32 %v3121_v6, %v3107_v19 }
 0x1a0   : > { %3080 = vst [vmem:[%s5600_s10 + $0x78] sm:$0xff] %v5663_v14  ;;  %v3062_v57 = vadd.f32 %v3037_v24, %v2764_v45  ;;  %v3087_v31 = vadd.f32 %v3086_v49, %v3056_v58 }
 0x1a1   : > { %v3123_v39 = vadd.f32 %v3122_v35, %v3108_v30 }
 0x1a2   : > { %3078 = vst [vmem:[%s5600_s10 + $0x68] sm:$0xff] %v3062_v57 }
 0x1a3   : > { %4369 = shalt.err (!%p4366_p13)
}
 0x1a4   : > { %s4370_s5 = scalar_lea.hbm %s5673_s29, 2048  ;;  %s4374_s26 = scalar_lea.hbm %s5787_s2, 8192 }
 0x1a5   : > { %p4371_p3 = scmp.ne.s32.totalorder %s5673_s29, %s4370_s5  ;;  %p4375_p6 = scmp.lt.s32.totalorder %s5673_s29, %s5787_s2 }
 0x1a6   : > { %p4376_p8 = scmp.lt.s32.totalorder %s4374_s26, %s4370_s5 }
 0x1a7   : > { %p4372_p4 = pnand %p4371_p3, %p4603_p5 }
 0x1a8   : > { %p4377_p9 = por %p4376_p8, %p4375_p6 }
 0x1a9   : > { %p4373_p2 = pneg %p4372_p4 }
 0x1ab   : > { %p4378_p10 = pnand %p4377_p9, %p4373_p2 }
 0x1ad   : > { %4381 = shalt.err (!%p4378_p10)
}
 0x1ae   : > { %s4505_s8 = smov 128   ;;  %s4506_s21 = smov 8   ;;  %v3110_v23 = vmul.f32 %v5619_v53, %v5619_v53  ;;  %v3088_v9 = vadd.f32 %v3087_v31, %v5619_v53  ;;  %v3124_v52 = vadd.f32 %v3123_v39, %v3109_v48  ;;  %v3111_v18 = vmul.f32 %v5637_v7, %v5637_v7 }
 0x1af   : > { %4158 = dma.vmem_to_hbm [thread:$0]  (%p4603_p5), %s5666_s18, 2048, %s5673_s29, %s5678_s30, %s4505_s8, %s4505_s8, %s4506_s21   ;;  %v3112_v27 = vmul.f32 %v5608_v10, %v5608_v10  ;;  %v3113_v12 = vmul.f32 %v5628_v15, %v5628_v15  ;;  %v3114_v43 = vmul.f32 %v5655_v25, %v5655_v25  ;;  %v3115_v28 = vmul.f32 %v3062_v57, %v3062_v57 }
 0x1b0   : > { %v3125_v16 = vadd.f32 %v3124_v52, %v3110_v23  ;;  %v3089_v22 = vadd.f32 %v3088_v9, %v5637_v7  ;;  %s200_s4 = sand.u32 1, %s4466_s13   ;;  %s3704_s29 = sshll.u32 %s5648_s19, 5  ;;  %vm3139_vm6 = vcmask 1040384  }
 0x1b1   : > { %s3304_s18 = sshll.u32 %s200_s4, 1  ;;  %s5727_s5 = scalar_lea.hbm %s5788_s3, %s3704_s29 }
 0x1b2   : > { %v3090_v46 = vadd.f32 %v3089_v22, %v5608_v10  ;;  %v3126_v61 = vadd.f32 %v3125_v16, %v3111_v18  ;;  %v3116_v10 = vmul.f32 %v5645_v38, %v5645_v38  ;;  %s202_s30 = scalar_lea.vmem [#allocation4], %s3304_s18  ;;  %s3148_s23 = scalar_lea.sflag [#allocation5], %s200_s4 }
 0x1b3   : > { %s3181_s25 = sshll.u32 %s202_s30, 4  ;;  %s4507_s19 = smov [#allocation4]   ;;  %s3182_s25 = int_to_ptr.vmem [resolvable:$true] %s3181_s25 }
 0x1b4   : > { %v3091_v8 = vadd.f32 %v3090_v46, %v5628_v15  ;;  %v3127_v53 = vadd.f32 %v3126_v61, %v3112_v27  ;;  %v3117_v15 = vmul.f32 %v5663_v14, %v5663_v14  ;;  %s4382_s10 = scalar_lea.vmem %s3182_s25, 32  ;;  %s4386_s26 = sshll.u32 %s4507_s19, 4  ;;  %s4387_s26 = int_to_ptr.vmem [resolvable:$false] %s4386_s26 }
 0x1b5   : > { %p4383_p5 = scmp.ne.s32.totalorder %s3182_s25, %s4382_s10  ;;  %s4388_s28 = scalar_lea.vmem %s4387_s26, 64 }
 0x1b6   : > { %v3092_v34 = vadd.f32 %v3091_v8, %v5655_v25  ;;  %v3128_v29 = vadd.f32 %v3127_v53, %v3113_v12  ;;  %p4389_p13 = scmp.lt.s32.totalorder %s3182_s25, %s4387_s26  ;;  %p4390_p3 = scmp.lt.s32.totalorder %s4388_s28, %s4382_s10 }
 0x1b7   : > { %p4384_p11 = pnand %p4383_p5, %p4640_p0 }
 0x1b8   : > { %v3093_v36 = vadd.f32 %v3092_v34, %v3062_v57  ;;  %v3129_v63 = vadd.f32 %v3128_v29, %v3114_v43  ;;  %p4391_p4 = por %p4390_p3, %p4389_p13 }
 0x1b9   : > { %p4385_p12 = pneg %p4384_p11 }
 0x1ba   : > { %v3094_v44 = vadd.f32 %v3093_v36, %v5645_v38  ;;  %v3130_v33 = vadd.f32 %v3129_v63, %v3115_v28 }
 0x1bb   : > { %p4392_p2 = pnand %p4391_p4, %p4385_p12 }
 0x1bc   : > { %v3095_v42 = vadd.f32 %v3094_v44, %v5663_v14  ;;  %v3131_v41 = vadd.f32 %v3130_v33, %v3116_v10 }
 0x1be   : > { %v3096_v62 = vrot.slane %v3095_v42, 4  ;;  %v3132_v37 = vadd.f32 %v3131_v41, %v3117_v15 }
 0x1c0   : > { %v3097_v32 = vadd.f32 %v3096_v62, %v3095_v42  ;;  %v3133_v7 = vrot.slane %v3132_v37, 4 }
 0x1c2   : > { %v3098_v4 = vrot.slane %v3097_v32, 2  ;;  %v3134_v20 = vadd.f32 %v3133_v7, %v3132_v37 }
 0x1c4   : > { %v3099_v21 = vadd.f32 %v3098_v4, %v3097_v32  ;;  %v3135_v0 = vrot.slane %v3134_v20, 2 }
 0x1c6   : > { %v3100_v13 = vrot.slane %v3099_v21, 1  ;;  %v3136_v54 = vadd.f32 %v3135_v0, %v3134_v20 }
 0x1c8   : > { %v3137_v11 = vrot.slane %v3136_v54, 1  ;;  %v3101_v55 = vadd.f32 %v3100_v13, %v3099_v21 }
 0x1ca   : > { %v3138_v2 = vadd.f32 %v3137_v11, %v3136_v54 }
 0x1cc   : > { %v3140_v38 = vsel %vm3139_vm6, %v3101_v55, %v3138_v2 }
 0x1cd   : > { %3141 = vst [vmem:[%s202_s30] sm:$0x3] %v3140_v38 }
 0x1ce   : > { %4395 = shalt.err (!%p4392_p2)
}
 0x1cf   : > { %s4396_s24 = scalar_lea.hbm %s5727_s5, 32  ;;  %s4400_s4 = scalar_lea.hbm %s5788_s3, 128 }
 0x1d0   : > { %p4397_p6 = scmp.ne.s32.totalorder %s5727_s5, %s4396_s24  ;;  %p4401_p10 = scmp.lt.s32.totalorder %s5727_s5, %s5788_s3 }
 0x1d1   : > { %p4402_p5 = scmp.lt.s32.totalorder %s4400_s4, %s4396_s24 }
 0x1d2   : > { %p4398_p8 = pnand %p4397_p6, %p4640_p0 }
 0x1d3   : > { %p4403_p11 = por %p4402_p5, %p4401_p10 }
 0x1d4   : > { %p4399_p9 = pneg %p4398_p8 }
 0x1d6   : > { %p4404_p12 = pnand %p4403_p11, %p4399_p9 }
 0x1d8   : > { %4407 = shalt.err (!%p4404_p12)
}
 0x1d9   : > { %4159 = dma.vmem_to_hbm [thread:$0]  (%p4640_p0), %s3182_s25, 32, %s5727_s5, %s3148_s23  }
 0x1da PF: > { %s5841_s30 = sld [smem:[#allocation8_spill]]  ;;  %p4169_p13 = scmp.ge.s32.totalorder %s4502_s22, 2 }
 0x1dc   : > { %p4163_p3 = pnand %p4169_p13, %p4615_p7 }
 0x1de   : > { %p4164_p4 = pneg %p4163_p3 }
 0x1e0   : > { %s3193_s9 = sand.u32 1, %s5841_s30  }
 0x1e1   : > { %s3194_s11 = scalar_lea.sflag [#allocation3], %s3193_s9 }
 0x1e2   : > { %4453 = dma.done.wait (%p4164_p4), %s3194_s11, 2048  }
 0x1e3   : > { %4455 = vsyncadd (%p4164_p4), %s3194_s11, 4294965248  ;;  %s3202_s10 = sand.u32 1, %s4462_s12   ;;  %p4166_p2 = pnand %p4169_p13, %p4646_p1 }
 0x1e4   : > { %s3203_s20 = scalar_lea.sflag [#allocation5], %s3202_s10 }
 0x1e5   : > { %p4167_p6 = pneg %p4166_p2 }
 0x1e7   : > { %4457 = dma.done.wait (%p4167_p6), %s3203_s20, 32  }
 0x1e8   : > { %4459 = vsyncadd (%p4167_p6), %s3203_s20, 4294967264  ;;  %s20_s22 = sadd.s32 1, %s4502_s22   ;;  %s5842_s6 = smov %s4630_s15 }
 0x1e9   : > { %p17_p0 = scmp.ge.s32.totalorder %s20_s22, 6   ;;  %s5843_s18 = sld [smem:[#allocation9_spill]] }
 0x1ea   : > { %s5844_s19 = sld [smem:[#allocation10_spill]]  ;;  %s5847_s12 = smov %s4466_s13 }
 0x1eb   : > { %s5845_s20 = sld [smem:[#allocation11_spill]]  ;;  %s5848_s13 = smov %s4470_s14 }
 0x1ec   : > { %s5846_s21 = sld [smem:[#allocation12_spill]]  ;;  %s5849_s14 = smov %s4627_s27 }
 0x1ed   : > { %s5850_s15 = smov %s4478_s16  ;;  %s5851_s16 = smov %s4482_s17 }
 0x1ee   : > { %s5852_s17 = smov %s5842_s6  ;;  %19 = sbr.rel (!%p17_p0) target bundleno = 9 (0x9), region = 90 }
 0x1f3   :  { %3208 = vsyncpa [#allocation3], 1 }
 0x1f4   :  { %3210 = vsyncpa [#allocation3 + $0x1], 1 }
 0x1f5   :  { %3211 = vsyncpa [#allocation5], 1 }
 0x1f6   :  { %3213 = vsyncpa [#allocation5 + $0x1], 1 }

</bundles_post_ra>
